<compile_context>
chip_gen: v7x
topology: tpu7x:2x2x1
jax: 0.10.0
libtpu: 0.0.40
codegen_flags: <defaults>
</compile_context>

<pallas_src>
import functools

import jax
import jax.numpy as jnp
import numpy as np
from jax.experimental import pallas as pl
from jax.experimental.pallas import tpu as pltpu

ALPHA = 3  # alpha channel index (torch: x[:, :, :, 3:4])


def ca_kernel(x_ref, rand_ref, w0_ref, w1_ref, out_ref, *, fire_rate, wp):
    C, N = out_ref.shape            # (channels, B * per-batch segment)
    k1 = wp + 1                     # 3x3-stencil margin in flattened-lane units
    # x_ref is (C, N + 2*k1); compute lane q lives at extended lane q + k1.

    # ---- perceive: separable 3x3 Sobel from lane-offset windows of the ext row ----
    # t-frame index j corresponds to compute lane j-1 (width N+2).
    x_up = x_ref[:, 0:N + 2]                       # row above   (dh = -1)
    x_md = x_ref[:, wp:wp + N + 2]                 # same row    (dh =  0)
    x_dn = x_ref[:, 2 * wp:2 * wp + N + 2]         # row below   (dh = +1)
    t1 = (x_up + x_dn) + 2.0 * x_md                # column filter [ 1, 2, 1]
    t2 = x_dn - x_up                               # column filter [-1, 0, 1]
    sx = (t1[:, 2:2 + N] - t1[:, 0:N]) * 0.125
    sy = ((t2[:, 0:N] + t2[:, 2:2 + N]) + 2.0 * t2[:, 1:1 + N]) * 0.125
    xc = x_ref[:, k1:k1 + N]                       # identity filter

    # ---- fused fc0 (+relu) and fc1 on the MXU: bf16 operands, f32 accumulation ----
    y = jnp.concatenate([xc, sx, sy], axis=0).astype(jnp.bfloat16)          # (3C, N)
    h = jnp.maximum(
        jnp.dot(w0_ref[...], y, preferred_element_type=jnp.float32), 0.0)   # (hid, N)
    dx = jnp.dot(w1_ref[...], h.astype(jnp.bfloat16),
                 preferred_element_type=jnp.float32)                        # (C, N)

    # ---- stochastic update: per-pixel mask broadcast across channel sublanes ----
    # rand is 2.0 outside the real HxW cells, so upd=0 there and new alpha stays 0.
    upd = (rand_ref[...] <= fire_rate).astype(jnp.float32)                  # (1, N)
    new_x = xc + dx * upd                                                   # (C, N)

    # ---- pre life mask: separable 3x3 max of INPUT alpha (in-bounds ext slices) ----
    a_ext = x_ref[ALPHA:ALPHA + 1, :]                                       # (1, N+2k1)
    w = N + 2 * wp
    rmax = jnp.maximum(jnp.maximum(a_ext[:, 0:w], a_ext[:, 1:1 + w]),
                       a_ext[:, 2:2 + w])
    pre_mx = jnp.maximum(jnp.maximum(rmax[:, 0:N], rmax[:, wp:wp + N]),
                         rmax[:, 2 * wp:2 * wp + N])

    # ---- post life mask: separable 3x3 max of UPDATED alpha via circular rolls ----
    # Wrap-around only contaminates lanes outside the real HxW cells (discarded by the
    # wrapper); the max stencil is symmetric so the roll direction is irrelevant.
    na = new_x[ALPHA:ALPHA + 1, :]                                          # (1, N)
    rmax2 = jnp.maximum(jnp.maximum(na, pltpu.roll(na, 1, 1)),
                        pltpu.roll(na, N - 1, 1))
    post_mx = jnp.maximum(jnp.maximum(rmax2, pltpu.roll(rmax2, wp, 1)),
                          pltpu.roll(rmax2, N - wp, 1))

    # zero padding is equivalent to -inf padding here because the test is "> 0.1"
    life = jnp.logical_and(pre_mx > 0.1, post_mx > 0.1).astype(jnp.float32)  # (1, N)
    out_ref[...] = new_x * life


def ca_forward(x, w0, w1, rand, *, fire_rate, step_size=1.0):
    """x: (B,H,W,C) f32; w0: (hidden, 3C); w1: (C, hidden); rand: (B,H,W,1) f32."""
    B, H, W, C = x.shape
    hidden = w0.shape[0]
    assert C >= 4, "needs an alpha channel at index 3"

    Hp, Wpad = H + 2, W + 2
    L = Hp * Wpad                        # flattened zero-padded grid per batch
    k1 = Wpad + 1                        # 3x3 stencil margin in flattened lanes
    Lo = ((L + 127) // 128) * 128        # 128-aligned per-batch lane segment
    N = B * Lo                           # folded compute / output width
    We = N + 2 * k1                      # extended-input width

    # ---- layout plumbing (plain JAX glue): channels -> sublanes, batches -> lanes ----
    xt = jnp.transpose(x, (0, 3, 1, 2)).astype(jnp.float32)               # (B, C, H, W)
    xg = jnp.pad(xt, ((0, 0), (0, 0), (1, 1), (1, 1))).reshape(B, C, L)   # zero ring
    seg = jnp.pad(xg, ((0, 0), (0, 0), (0, Lo - L)))                      # (B, C, Lo)
    x_ext = jnp.pad(jnp.transpose(seg, (1, 0, 2)).reshape(C, N),
                    ((0, 0), (k1, k1)))                                   # (C, We)

    # rand: real draws at the HxW cells, 2.0 (> fire_rate) on ring / segment padding
    rg = jnp.pad(rand[..., 0].astype(jnp.float32), ((0, 0), (1, 1), (1, 1)),
                 constant_values=2.0).reshape(B, L)
    rand_f = jnp.pad(rg, ((0, 0), (0, Lo - L)),
                     constant_values=2.0).reshape(1, N)                   # (1, N)

    # fc0 columns are interleaved [id_c, sx_c, sy_c] (grouped-conv order); reorder into
    # [all-id | all-sx | all-sy] blocks to match the kernel's [xc; sx; sy] stacking.
    w0_f = jnp.concatenate([w0[:, 0::3], w0[:, 1::3], w0[:, 2::3]],
                           axis=1).astype(jnp.bfloat16)                   # (hidden, 3C)
    w1_s = (w1 * step_size).astype(jnp.bfloat16)                          # (C, hidden)

    kernel = functools.partial(ca_kernel, fire_rate=float(fire_rate), wp=Wpad)

    out = pl.pallas_call(
        kernel,
        out_shape=jax.ShapeDtypeStruct((C, N), jnp.float32),
        grid_spec=pltpu.PrefetchScalarGridSpec(
            num_scalar_prefetch=0,
            grid=(1,),
            in_specs=[
                pl.BlockSpec((C, We), lambda i: (0, 0)),          # x_ext
                pl.BlockSpec((1, N), lambda i: (0, 0)),           # rand
                pl.BlockSpec((hidden, 3 * C), lambda i: (0, 0)),  # w0 (bf16, reordered)
                pl.BlockSpec((C, hidden), lambda i: (0, 0)),      # w1 (bf16, *step)
            ],
            out_specs=pl.BlockSpec((C, N), lambda i: (0, 0)),
        ),
        compiler_params=pltpu.CompilerParams(dimension_semantics=("arbitrary",)),
    )(x_ext, rand_f, w0_f, w1_s)

    # back to the module's external (B, H, W, C) layout
    out = (out.reshape(C, B, Lo)[:, :, :L]
              .reshape(C, B, Hp, Wpad)[:, :, 1:1 + H, 1:1 + W])
    return jnp.transpose(out, (1, 2, 3, 0))


# ---------------- pure-JAX reference (mirrors the torch forward) ----------------
# Same precision policy as the kernel: f32 everywhere, bf16 only for matmul operands.
def ca_forward_ref(x, w0, w1, rand, *, fire_rate, step_size=1.0):
    B, H, W, C = x.shape
    row_w = (1.0, 2.0, 1.0)
    col_w = (-1.0, 0.0, 1.0)
    xp = jnp.pad(x, ((0, 0), (1, 1), (1, 1), (0, 0)))

    ident = x
    sx = jnp.zeros_like(x)
    sy = jnp.zeros_like(x)
    for dh in (-1, 0, 1):
        for dw in (-1, 0, 1):
            if dh == 0 and dw == 0:
                continue
            win = xp[:, 1 + dh:1 + dh + H, 1 + dw:1 + dw + W, :]
            wx = row_w[dh + 1] * col_w[dw + 1] / 8.0
            wy = row_w[dw + 1] * col_w[dh + 1] / 8.0
            if wx != 0.0:
                sx = sx + wx * win
            if wy != 0.0:
                sy = sy + wy * win

    # grouped-conv output order: channels interleaved [id_c, sx_c, sy_c]
    y = jnp.stack([ident, sx, sy], axis=-1).reshape(B, H, W, 3 * C)

    def max_pool3(a):
        ap = jnp.pad(a, ((0, 0), (1, 1), (1, 1), (0, 0)))   # 0-pad ~ -inf pad for ">0.1"
        out = jnp.full_like(a, -jnp.inf)
        for r in range(3):
            for c in range(3):
                out = jnp.maximum(out, ap[:, r:r + H, c:c + W, :])
        return out

    pre_life = max_pool3(x[..., 3:4]) > 0.1

    h = jnp.maximum(
        jnp.dot(y.astype(jnp.bfloat16), w0.T.astype(jnp.bfloat16),
                preferred_element_type=jnp.float32), 0.0)
    dx = jnp.dot(h.astype(jnp.bfloat16), w1.T.astype(jnp.bfloat16),
                 preferred_element_type=jnp.float32) * step_size

    upd = (rand <= fire_rate).astype(x.dtype)
    new_x = x + dx * upd
    post_life = max_pool3(new_x[..., 3:4]) > 0.1
    life = jnp.logical_and(pre_life, post_life).astype(x.dtype)
    return new_x * life


if __name__ == "__main__":
    B, H, W = 2, 16, 16
    n_channels = 16          # groups=16 is hardcoded in the torch module's perceive()
    hidden_channels = 32
    fire_rate = 0.5
    step_size = 1.0

    key = jax.random.PRNGKey(0)
    kx, kw0, kw1, kr = jax.random.split(key, 4)
    x = jax.random.normal(kx, (B, H, W, n_channels), dtype=jnp.float32)
    w0 = 0.1 * jax.random.normal(kw0, (hidden_channels, 3 * n_channels), dtype=jnp.float32)
    w1 = 0.1 * jax.random.normal(kw1, (n_channels, hidden_channels), dtype=jnp.float32)
    rand = jax.random.uniform(kr, (B, H, W, 1), dtype=jnp.float32)   # torch.rand equivalent

    out = ca_forward(x, w0, w1, rand, fire_rate=fire_rate, step_size=step_size)
    out = jax.block_until_ready(out)

    ref = ca_forward_ref(x, w0, w1, rand, fire_rate=fire_rate, step_size=step_size)
    np.testing.assert_allclose(np.asarray(out), np.asarray(ref), rtol=1e-2, atol=1e-2)

    print("KERNEL_OK")
</pallas_src>

<mosaic_0001>
module attributes {stable_mosaic.version = 11 : i64} {
  func.func @ca_kernel(%arg0: i32, %arg1: memref<16x806xf32, #tpu.memory_space<vmem>>, %arg2: memref<1x768xf32, #tpu.memory_space<vmem>>, %arg3: memref<32x48xbf16, #tpu.memory_space<vmem>>, %arg4: memref<16x32xbf16, #tpu.memory_space<vmem>>, %arg5: memref<16x768xf32, #tpu.memory_space<vmem>>) attributes {dimension_semantics = [#tpu.dimension_semantics<arbitrary>], iteration_bounds = array<i64: 1>, scalar_prefetch = 0 : i64, scratch_operands = 0 : i64, tpu.core_type = #tpu.core_type<tc>, window_params = [{pipeline_mode = #tpu.pipeline_mode<synchronous>, transform_indices = @transform_0, window_bounds = array<i64: 16, 806>}, {pipeline_mode = #tpu.pipeline_mode<synchronous>, transform_indices = @transform_1, window_bounds = array<i64: 1, 768>}, {pipeline_mode = #tpu.pipeline_mode<synchronous>, transform_indices = @transform_2, window_bounds = array<i64: 32, 48>}, {pipeline_mode = #tpu.pipeline_mode<synchronous>, transform_indices = @transform_3, window_bounds = array<i64: 16, 32>}, {pipeline_mode = #tpu.pipeline_mode<synchronous>, transform_indices = @transform_4, window_bounds = array<i64: 16, 768>}]} {
    %c0 = arith.constant 0 : index
    %c0_0 = arith.constant 0 : index
    %0 = vector.load %arg1[%c0, %c0_0] : memref<16x806xf32, #tpu.memory_space<vmem>>, vector<16x770xf32>
    %c0_1 = arith.constant 0 : index
    %c18 = arith.constant 18 : index
    %1 = vector.load %arg1[%c0_1, %c18] : memref<16x806xf32, #tpu.memory_space<vmem>>, vector<16x770xf32>
    %c0_2 = arith.constant 0 : index
    %c36 = arith.constant 36 : index
    %2 = vector.load %arg1[%c0_2, %c36] : memref<16x806xf32, #tpu.memory_space<vmem>>, vector<16x770xf32>
    %3 = arith.addf %0, %2 : vector<16x770xf32>
    %cst = arith.constant 2.000000e+00 : f32
    %4 = vector.broadcast %cst : f32 to vector<16x770xf32>
    %5 = arith.mulf %4, %1 : vector<16x770xf32>
    %6 = arith.addf %3, %5 : vector<16x770xf32>
    %7 = arith.subf %2, %0 : vector<16x770xf32>
    %8 = vector.extract_strided_slice %6 {offsets = [0, 2], sizes = [16, 768], strides = [1, 1]} : vector<16x770xf32> to vector<16x768xf32>
    %9 = vector.extract_strided_slice %6 {offsets = [0, 0], sizes = [16, 768], strides = [1, 1]} : vector<16x770xf32> to vector<16x768xf32>
    %10 = arith.subf %8, %9 : vector<16x768xf32>
    %cst_3 = arith.constant 1.250000e-01 : f32
    %11 = vector.broadcast %cst_3 : f32 to vector<16x768xf32>
    %12 = arith.mulf %10, %11 : vector<16x768xf32>
    %13 = vector.extract_strided_slice %7 {offsets = [0, 0], sizes = [16, 768], strides = [1, 1]} : vector<16x770xf32> to vector<16x768xf32>
    %14 = vector.extract_strided_slice %7 {offsets = [0, 2], sizes = [16, 768], strides = [1, 1]} : vector<16x770xf32> to vector<16x768xf32>
    %15 = arith.addf %13, %14 : vector<16x768xf32>
    %16 = vector.extract_strided_slice %7 {offsets = [0, 1], sizes = [16, 768], strides = [1, 1]} : vector<16x770xf32> to vector<16x768xf32>
    %cst_4 = arith.constant 2.000000e+00 : f32
    %17 = vector.broadcast %cst_4 : f32 to vector<16x768xf32>
    %18 = arith.mulf %17, %16 : vector<16x768xf32>
    %19 = arith.addf %15, %18 : vector<16x768xf32>
    %cst_5 = arith.constant 1.250000e-01 : f32
    %20 = vector.broadcast %cst_5 : f32 to vector<16x768xf32>
    %21 = arith.mulf %19, %20 : vector<16x768xf32>
    %c0_6 = arith.constant 0 : index
    %c19 = arith.constant 19 : index
    %22 = vector.load %arg1[%c0_6, %c19] : memref<16x806xf32, #tpu.memory_space<vmem>>, vector<16x768xf32>
    %23 = tpu.concatenate %22, %12, %21 in 0 : vector<16x768xf32>, vector<16x768xf32>, vector<16x768xf32> -> vector<48x768xf32>
    %24 = arith.truncf %23 : vector<48x768xf32> to vector<48x768xbf16>
    %c0_7 = arith.constant 0 : index
    %c0_8 = arith.constant 0 : index
    %25 = vector.load %arg3[%c0_7, %c0_8] : memref<32x48xbf16, #tpu.memory_space<vmem>>, vector<32x48xbf16>
    %cst_9 = arith.constant dense<0.000000e+00> : vector<32x768xf32>
    %26 = tpu.matmul %25, %24, %cst_9 {dimension_numbers = #tpu.dot_dimension_numbers<[1], [0], [0], [1], [0, 0, 1, 1], [], []>} : vector<32x48xbf16>, vector<48x768xbf16>, vector<32x768xf32> -> vector<32x768xf32>
    %cst_10 = arith.constant 0.000000e+00 : f32
    %27 = vector.broadcast %cst_10 : f32 to vector<32x768xf32>
    %28 = arith.maximumf %26, %27 : vector<32x768xf32>
    %c0_11 = arith.constant 0 : index
    %c0_12 = arith.constant 0 : index
    %29 = vector.load %arg4[%c0_11, %c0_12] : memref<16x32xbf16, #tpu.memory_space<vmem>>, vector<16x32xbf16>
    %30 = arith.truncf %28 : vector<32x768xf32> to vector<32x768xbf16>
    %cst_13 = arith.constant dense<0.000000e+00> : vector<16x768xf32>
    %31 = tpu.matmul %29, %30, %cst_13 {dimension_numbers = #tpu.dot_dimension_numbers<[1], [0], [0], [1], [0, 0, 1, 1], [], []>} : vector<16x32xbf16>, vector<32x768xbf16>, vector<16x768xf32> -> vector<16x768xf32>
    %c0_14 = arith.constant 0 : index
    %c0_15 = arith.constant 0 : index
    %32 = vector.load %arg2[%c0_14, %c0_15] : memref<1x768xf32, #tpu.memory_space<vmem>>, vector<1x768xf32>
    %cst_16 = arith.constant 5.000000e-01 : f32
    %33 = vector.broadcast %cst_16 : f32 to vector<1x768xf32>
    %34 = arith.cmpf ole, %32, %33 : vector<1x768xf32>
    %35 = arith.extui %34 : vector<1x768xi1> to vector<1x768xi32>
    %36 = arith.sitofp %35 : vector<1x768xi32> to vector<1x768xf32>
    %37 = vector.broadcast %36 : vector<1x768xf32> to vector<16x768xf32>
    %38 = arith.mulf %31, %37 : vector<16x768xf32>
    %39 = arith.addf %22, %38 : vector<16x768xf32>
    %c3 = arith.constant 3 : index
    %c0_17 = arith.constant 0 : index
    %40 = vector.load %arg1[%c3, %c0_17] : memref<16x806xf32, #tpu.memory_space<vmem>>, vector<1x806xf32>
    %41 = vector.extract_strided_slice %40 {offsets = [0, 0], sizes = [1, 804], strides = [1, 1]} : vector<1x806xf32> to vector<1x804xf32>
    %42 = vector.extract_strided_slice %40 {offsets = [0, 1], sizes = [1, 804], strides = [1, 1]} : vector<1x806xf32> to vector<1x804xf32>
    %43 = arith.maximumf %41, %42 : vector<1x804xf32>
    %44 = vector.extract_strided_slice %40 {offsets = [0, 2], sizes = [1, 804], strides = [1, 1]} : vector<1x806xf32> to vector<1x804xf32>
    %45 = arith.maximumf %43, %44 : vector<1x804xf32>
    %46 = vector.extract_strided_slice %45 {offsets = [0, 0], sizes = [1, 768], strides = [1, 1]} : vector<1x804xf32> to vector<1x768xf32>
    %47 = vector.extract_strided_slice %45 {offsets = [0, 18], sizes = [1, 768], strides = [1, 1]} : vector<1x804xf32> to vector<1x768xf32>
    %48 = arith.maximumf %46, %47 : vector<1x768xf32>
    %49 = vector.extract_strided_slice %45 {offsets = [0, 36], sizes = [1, 768], strides = [1, 1]} : vector<1x804xf32> to vector<1x768xf32>
    %50 = arith.maximumf %48, %49 : vector<1x768xf32>
    %51 = vector.extract_strided_slice %39 {offsets = [3, 0], sizes = [1, 768], strides = [1, 1]} : vector<16x768xf32> to vector<1x768xf32>
    %c1_i32 = arith.constant 1 : i32
    %52 = tpu.dynamic_rotate %51 by %c1_i32 dim 1 : vector<1x768xf32>, i32 -> vector<1x768xf32>
    %53 = arith.maximumf %51, %52 : vector<1x768xf32>
    %c767_i32 = arith.constant 767 : i32
    %54 = tpu.dynamic_rotate %51 by %c767_i32 dim 1 : vector<1x768xf32>, i32 -> vector<1x768xf32>
    %55 = arith.maximumf %53, %54 : vector<1x768xf32>
    %c18_i32 = arith.constant 18 : i32
    %56 = tpu.dynamic_rotate %55 by %c18_i32 dim 1 : vector<1x768xf32>, i32 -> vector<1x768xf32>
    %57 = arith.maximumf %55, %56 : vector<1x768xf32>
    %c750_i32 = arith.constant 750 : i32
    %58 = tpu.dynamic_rotate %55 by %c750_i32 dim 1 : vector<1x768xf32>, i32 -> vector<1x768xf32>
    %59 = arith.maximumf %57, %58 : vector<1x768xf32>
    %cst_18 = arith.constant 1.000000e-01 : f32
    %60 = vector.broadcast %cst_18 : f32 to vector<1x768xf32>
    %61 = arith.cmpf ogt, %50, %60 : vector<1x768xf32>
    %cst_19 = arith.constant 1.000000e-01 : f32
    %62 = vector.broadcast %cst_19 : f32 to vector<1x768xf32>
    %63 = arith.cmpf ogt, %59, %62 : vector<1x768xf32>
    %64 = arith.andi %61, %63 : vector<1x768xi1>
    %65 = arith.extui %64 : vector<1x768xi1> to vector<1x768xi32>
    %66 = arith.sitofp %65 : vector<1x768xi32> to vector<1x768xf32>
    %67 = vector.broadcast %66 : vector<1x768xf32> to vector<16x768xf32>
    %68 = arith.mulf %39, %67 : vector<16x768xf32>
    %c0_20 = arith.constant 0 : index
    %c0_21 = arith.constant 0 : index
    %69 = vector.load %arg5[%c0_20, %c0_21] : memref<16x768xf32, #tpu.memory_space<vmem>>, vector<16x768xf32>
    tpu.vector_store %arg5[%c0_20, %c0_21], %68 {strides = array<i32>} : memref<16x768xf32, #tpu.memory_space<vmem>>, vector<16x768xf32>,
    return
  }
  func.func @transform_0(%arg0: i32) -> (i32, i32) {
    %c0_i32 = arith.constant 0 : i32
    %c0_i32_0 = arith.constant 0 : i32
    %c0_i32_1 = arith.constant 0 : i32
    return %c0_i32, %c0_i32_0 : i32, i32
  }
  func.func @transform_1(%arg0: i32) -> (i32, i32) {
    %c0_i32 = arith.constant 0 : i32
    %c0_i32_0 = arith.constant 0 : i32
    %c0_i32_1 = arith.constant 0 : i32
    return %c0_i32, %c0_i32_0 : i32, i32
  }
  func.func @transform_2(%arg0: i32) -> (i32, i32) {
    %c0_i32 = arith.constant 0 : i32
    %c0_i32_0 = arith.constant 0 : i32
    %c0_i32_1 = arith.constant 0 : i32
    return %c0_i32, %c0_i32_0 : i32, i32
  }
  func.func @transform_3(%arg0: i32) -> (i32, i32) {
    %c0_i32 = arith.constant 0 : i32
    %c0_i32_0 = arith.constant 0 : i32
    %c0_i32_1 = arith.constant 0 : i32
    return %c0_i32, %c0_i32_0 : i32, i32
  }
  func.func @transform_4(%arg0: i32) -> (i32, i32) {
    %c0_i32 = arith.constant 0 : i32
    %c0_i32_0 = arith.constant 0 : i32
    %c0_i32_1 = arith.constant 0 : i32
    return %c0_i32, %c0_i32_0 : i32, i32
  }
}

</mosaic_0001>

<bundles_post_ra>
// kernel: tpu_custom_call.1
= control target key start
LH: loop header
LB: loop body
LE: loop exit
PB: predicated region body
PF: predicated region fallthrough
CT: control target
= control target key end

     0   :  { %9 = vsyncpa [#allocation3], 0  ;;  %s3200_s0 = inlined_call_operand.hbm [shape: f32[16,806], index: 0, kind: input, shape index: {}]   ;;  %s3201_s1 = inlined_call_operand.hbm [shape: f32[1,768], index: 1, kind: input, shape index: {}]   ;;  %s3202_s2 = inlined_call_operand.hbm [shape: bf16[32,48], index: 2, kind: input, shape index: {}]   ;;  %s3203_s3 = inlined_call_operand.vmem [shape: bf16[16,32], index: 3, kind: input, shape index: {}]   ;;  %s3204_s4 = inlined_call_operand.hbm [shape: f32[16,768], index: 4, kind: output, shape index: {}]  }
   0x1   :  { %10 = vsyncpa [#allocation6], 0 }
   0x2   :  { %11 = vsyncpa [#allocation4], 0  ;;  %s2167_s15 = smov [#allocation5]   ;;  %s2168_s17 = smov [#allocation2]  }
   0x3   :  { %s30_s16 = sshll.u32 %s2167_s15, 4  ;;  %s17_s18 = sshll.u32 %s2168_s17, 4  ;;  %s31_s16 = int_to_ptr.vmem [resolvable:$true] %s30_s16  ;;  %s2217_s18 = int_to_ptr.vmem [resolvable:$true] %s17_s18 }
   0x4   :  { %s2073_s21 = scalar_lea.hbm %s3201_s1, 96 }
   0x5   :  { %p2074_p0 = scmp.ne.s32.totalorder %s3201_s1, %s2073_s21  ;;  %p2077_p1 = scmp.lt.u32.totalorder %s2073_s21, %s3201_s1 }
   0x7   :  { %p2079_p2 = pnand %p2077_p1, %p2074_p0 }
   0x9   :  { %2082 = shalt.err (!%p2079_p2)
}
   0xa   :  { %s2083_s26 = scalar_lea.vmem %s31_s16, 96  ;;  %p2088_p4 = scmp.lt.s32.totalorder %s31_s16, %s31_s16 }
   0xb   :  { %p2084_p3 = scmp.ne.s32.totalorder %s31_s16, %s2083_s26  ;;  %p2089_p5 = scmp.lt.s32.totalorder %s2083_s26, %s2083_s26 }
   0xd   :  { %p2090_p6 = por %p2089_p5, %p2088_p4 }
   0xf   :  { %p2091_p7 = pnand %p2090_p6, %p2084_p3 }
  0x11   :  { %2094 = shalt.err (!%p2091_p7)
}
  0x12   :  { %33 = dma.hbm_to_vmem [thread:$0]  %s3201_s1, 96, %s31_s16, [#allocation6]  }
  0x13   :  { %s2095_s5 = scalar_lea.hbm %s3200_s0, 1792 }
  0x14   :  { %p2096_p8 = scmp.ne.s32.totalorder %s3200_s0, %s2095_s5  ;;  %p2099_p9 = scmp.lt.u32.totalorder %s2095_s5, %s3200_s0 }
  0x16   :  { %p2101_p10 = pnand %p2099_p9, %p2096_p8 }
  0x18   :  { %2104 = shalt.err (!%p2101_p10)
}
  0x19   :  { %s2105_s10 = scalar_lea.vmem %s2217_s18, 1792  ;;  %p2110_p12 = scmp.lt.s32.totalorder %s2217_s18, %s2217_s18 }
  0x1a   :  { %p2106_p11 = scmp.ne.s32.totalorder %s2217_s18, %s2105_s10  ;;  %p2111_p13 = scmp.lt.s32.totalorder %s2105_s10, %s2105_s10 }
  0x1c   :  { %p2112_p0 = por %p2111_p13, %p2110_p12 }
  0x1e   :  { %p2113_p1 = pnand %p2112_p0, %p2106_p11 }
  0x20   :  { %2116 = shalt.err (!%p2113_p1)
}
  0x21   :  { %s2169_s1 = smov 896   ;;  %s2170_s11 = smov 56  }
  0x22   :  { %23 = dma.hbm_to_vmem [thread:$0]  %s3200_s0, 1792, %s2217_s18, [#allocation3], %s2169_s1, %s2169_s1, %s2170_s11  }
  0x23   :  { %s2171_s14 = smov [#allocation7]   ;;  %s2117_s19 = scalar_lea.hbm %s3202_s2, 256 }
  0x24   :  { %s39_s15 = sshll.u32 %s2171_s14, 4  ;;  %p2118_p2 = scmp.ne.s32.totalorder %s3202_s2, %s2117_s19  ;;  %s40_s15 = int_to_ptr.vmem [resolvable:$true] %s39_s15 }
  0x25   :  { %p2121_p3 = scmp.lt.u32.totalorder %s2117_s19, %s3202_s2 }
  0x27   :  { %p2123_p4 = pnand %p2121_p3, %p2118_p2 }
  0x29   :  { %2126 = shalt.err (!%p2123_p4)
}
  0x2a   :  { %s2127_s24 = scalar_lea.vmem %s40_s15, 256  ;;  %p2132_p6 = scmp.lt.s32.totalorder %s40_s15, %s40_s15 }
  0x2b   :  { %p2128_p5 = scmp.ne.s32.totalorder %s40_s15, %s2127_s24  ;;  %p2133_p7 = scmp.lt.s32.totalorder %s2127_s24, %s2127_s24 }
  0x2d   :  { %p2134_p8 = por %p2133_p7, %p2132_p6 }
  0x2f   :  { %p2135_p9 = pnand %p2134_p8, %p2128_p5 }
  0x31   :  { %2138 = shalt.err (!%p2135_p9)
}
  0x32   :  { %s2172_s0 = smov 64   ;;  %s2173_s18 = smov 4  }
  0x33   :  { %45 = dma.hbm_to_vmem [thread:$0]  %s3202_s2, 256, %s40_s15, [#allocation6], %s2172_s0, %s2172_s0, %s2173_s18  }
  0x34   :  { %2161 = dma.done.wait [#allocation3], 1792  }
  0x35   :  { %2162 = vsyncadd [#allocation3], 4294965504 }
  0x36   :  { %2163 = dma.done.wait [#allocation6], 352  }
  0x37   :  { %2164 = vsyncadd [#allocation6], 4294966944  ;;  %v2260_v0 = vld [vmem:[#allocation2 + $0x10] sm:$0xff]  ;;  %v2262_v1 = vld [vmem:[#allocation2] sm:$0xff]  ;;  %s2174_s27 = smov 92   ;;  %s2175_s2 = smov 110  }
  0x38   :  { %90 = vrot.lane.b32.xlu1 %v2260_v0, %s2174_s27  ;;  %86 = vrot.lane.b32.xlu0 %v2262_v1, %s2174_s27  ;;  %v2268_v2 = vld [vmem:[#allocation2 + $0x18] sm:$0xff]  ;;  %v2270_v3 = vld [vmem:[#allocation2 + $0x8] sm:$0xff]  ;;  %v2272_v4 = vld [vmem:[#allocation2 + $0x40] sm:$0xff]  ;;  %v155_v9 = vmul.f32 2.0, %v2262_v1  ;;  %v157_v11 = vmul.f32 2.0, %v2260_v0  ;;  %s2176_s28 = smov 36  }
  0x39   :  { %3212 = vst [vmem:[#allocation12_spill] sm:$0xff] %v2268_v2  ;;  %v2278_v5 = vld [vmem:[#allocation2 + $0x38] sm:$0xff]  ;;  %v2284_v6 = vld [vmem:[#allocation2 + $0x50] sm:$0xff]  ;;  %v2286_v7 = vld [vmem:[#allocation2 + $0x48] sm:$0xff]  ;;  %v156_v8 = vmul.f32 2.0, %v2270_v3  ;;  %v158_v10 = vmul.f32 2.0, %v2268_v2 }
  0x3a   :  { %3213 = vst [vmem:[#allocation13_spill] sm:$0xff] %v2284_v6  ;;  %3214 = vst [vmem:[#allocation14_spill] sm:$0xff] %v2286_v7  ;;  %v163_v12 = vmul.f32 2.0, %v2272_v4  ;;  %v162_v13 = vmul.f32 2.0, %v2278_v5  ;;  %v165_v14 = vmul.f32 2.0, %v2284_v6  ;;  %v164_v15 = vmul.f32 2.0, %v2286_v7 }
  0x3b   :  { %v2316_v16 = vld [vmem:[#allocation2 + $0x20] sm:$0xff]  ;;  %v2326_v17 = vld [vmem:[#allocation2 + $0x58] sm:$0xff]  ;;  %v2332_v18 = vld [vmem:[#allocation2 + $0x28] sm:$0xff]  ;;  %vm280_vm0 = vcmask 293888   ;;  %s2177_s29 = smov 126   ;;  %vm114_vm1 = vcmask 752640  }
  0x3c   :  { %92 = vrot.lane.b32.xlu1 %v2268_v2, %s2174_s27  ;;  %88 = vrot.lane.b32.xlu0 %v2270_v3, %s2174_s27  ;;  %3215 = vst [vmem:[#allocation15_spill] sm:$0xff] %v2316_v16  ;;  %3216 = vst [vmem:[#allocation16_spill] sm:$0xff] %v2326_v17  ;;  %v2338_v19 = vld [vmem:[#allocation2 + $0x30] sm:$0xff]  ;;  %v2344_v20 = vld [vmem:[#allocation2 + $0x68] sm:$0xff]  ;;  %v160_v22 = vmul.f32 2.0, %v2332_v18  ;;  %v159_v23 = vmul.f32 2.0, %v2316_v16 }
  0x3d   :  { %3217 = vst [vmem:[#allocation17_spill] sm:$0xff] %v2332_v18  ;;  %v2346_v21 = vld [vmem:[#allocation2 + $0x60] sm:$0xff]  ;;  %v166_v24 = vmul.f32 2.0, %v2326_v17  ;;  %v161_v25 = vmul.f32 2.0, %v2338_v19  ;;  %v168_v27 = vmul.f32 2.0, %v2344_v20  ;;  %vm211_vm2 = vcmask 900096  }
  0x3e   :  { %3218 = vst [vmem:[#allocation18_spill] sm:$0xff] %v2346_v21  ;;  %v167_v26 = vmul.f32 2.0, %v2346_v21  ;;  %s2178_s30 = smov 2   ;;  %s2179_s5 = smov 127   ;;  %vm357_vm3 = vcmask 15360   ;;  %vm452_vm4 = vcmask 1031168  }
  0x3f   :  { %s2180_s6 = smov 17   ;;  %vm549_vm5 = vcmask 1039360   ;;  %s2181_s7 = smov 111   ;;  %vm646_vm6 = vcmask 138240   ;;  %vm715_vm7 = vcmask 908288   ;;  %vm840_vm8 = vcmask 891904  }
  0x40   :  { %102 = vrot.lane.b32.xlu1 %v2272_v4, %s2174_s27  ;;  %100 = vrot.lane.b32.xlu0 %v2278_v5, %s2174_s27  ;;  %s2182_s8 = smov 109   ;;  %vm877_vm9 = vcmask 392192   ;;  %vm1086_vm10 = vcmask 261120   ;;  %vm1302_vm12 = vcmask 154624   ;;  %s2186_s1 = smov 1  }
  0x41   :  { %s2187_s11 = smov 18   ;;  %s2189_s12 = smov [#allocation8]  }
  0x42   :  { %s1919_s13 = sshll.u32 %s2189_s12, 4  ;;  %s1920_s13 = int_to_ptr.vmem [resolvable:$true] %s1919_s13 }
  0x43   :  { %s2139_s14 = scalar_lea.vmem %s1920_s13, 1536  ;;  %p2144_p11 = scmp.lt.s32.totalorder %s1920_s13, %s1920_s13 }
  0x44   :  { %106 = vrot.lane.b32.xlu1 %v2284_v6, %s2174_s27  ;;  %104 = vrot.lane.b32.xlu0 %v2286_v7, %s2174_s27  ;;  %p2140_p10 = scmp.ne.s32.totalorder %s1920_s13, %s2139_s14  ;;  %p2145_p12 = scmp.lt.s32.totalorder %s2139_s14, %s2139_s14 }
  0x46   :  { %p2146_p13 = por %p2145_p12, %p2144_p11 }
  0x48   :  { %185 = vrot.lane.b32.xlu1 %v156_v8, %s2175_s2  ;;  %183 = vrot.lane.b32.xlu0 %v155_v9, %s2175_s2  ;;  %p2147_p0 = pnand %p2146_p13, %p2140_p10 }
  0x4c   :  { %189 = vrot.lane.b32.xlu1 %v158_v10, %s2175_s2  ;;  %187 = vrot.lane.b32.xlu0 %v157_v11, %s2175_s2 }
  0x50   :  { %199 = vrot.lane.b32.xlu1 %v163_v12, %s2175_s2  ;;  %197 = vrot.lane.b32.xlu0 %v162_v13, %s2175_s2 }
  0x54   :  { %203 = vrot.lane.b32.xlu1 %v165_v14, %s2175_s2  ;;  %201 = vrot.lane.b32.xlu0 %v164_v15, %s2175_s2 }
  0x58   :  { %254 = vrot.lane.b32.xlu1 %v2270_v3, %s2176_s28  ;;  %252 = vrot.lane.b32.xlu0 %v2262_v1, %s2176_s28 }
  0x5c   :  { %258 = vrot.lane.b32.xlu1 %v2268_v2, %s2176_s28  ;;  %256 = vrot.lane.b32.xlu0 %v2260_v0, %s2176_s28 }
  0x60   :  { %266 = vrot.lane.b32.xlu1 %v2278_v5, %s2176_s28  ;;  %260 = vrot.lane.b32.xlu0 %v2316_v16, %s2176_s28 }
  0x64   :  { %270 = vrot.lane.b32.xlu1 %v2286_v7, %s2176_s28  ;;  %268 = vrot.lane.b32.xlu0 %v2272_v4, %s2176_s28 }
  0x68   :  { %274 = vrot.lane.b32.xlu1 %v2326_v17, %s2176_s28  ;;  %272 = vrot.lane.b32.xlu0 %v2284_v6, %s2176_s28 }
  0x6c   :  { %96 = vrot.lane.b32.xlu1 %v2332_v18, %s2174_s27  ;;  %94 = vrot.lane.b32.xlu0 %v2316_v16, %s2174_s27 }
  0x70   :  { %108 = vrot.lane.b32.xlu1 %v2326_v17, %s2174_s27  ;;  %98 = vrot.lane.b32.xlu0 %v2338_v19, %s2174_s27 }
  0x74   :  { %112 = vrot.lane.b32.xlu1 %v2344_v20, %s2174_s27  ;;  %110 = vrot.lane.b32.xlu0 %v2346_v21, %s2174_s27 }
  0x78   :  { %193 = vrot.lane.b32.xlu1 %v160_v22, %s2175_s2  ;;  %191 = vrot.lane.b32.xlu0 %v159_v23, %s2175_s2 }
  0x7c   :  { %205 = vrot.lane.b32.xlu1 %v166_v24, %s2175_s2  ;;  %195 = vrot.lane.b32.xlu0 %v161_v25, %s2175_s2 }
  0x80   :  { %207 = vrot.lane.b32.xlu0 %v167_v26, %s2175_s2  ;;  %209 = vrot.lane.b32.xlu1 %v168_v27, %s2175_s2 }
  0x84   :  { %262 = vrot.lane.b32.xlu0 %v2332_v18, %s2176_s28  ;;  %264 = vrot.lane.b32.xlu1 %v2338_v19, %s2176_s28 }
  0x88   :  { %276 = vrot.lane.b32.xlu0 %v2346_v21, %s2176_s28  ;;  %278 = vrot.lane.b32.xlu1 %v2344_v20, %s2176_s28 }
  0xaa   :  { %v2372_v28 = vpop.permute.xlu1 %90  ;;  %v87_v29 = vpop.permute.xlu0 %86 }
  0xae   :  { %v2374_v30 = vpop.permute.xlu1 %92  ;;  %v2376_v31 = vpop.permute.xlu0 %88 }
  0xaf   :  { %v115_v9 = vsel %vm114_vm1, %v87_v29, %v2376_v31  ;;  %v117_v24 = vsel %vm114_vm1, %v2372_v28, %v2374_v30 }
  0xb0   :  { %v141_v22 = vadd.f32 %v115_v9, %v2262_v1 }
  0xb2   :  { %v2378_v32 = vpop.permute.xlu1 %102  ;;  %v2380_v33 = vpop.permute.xlu0 %100 }
  0xb6   :  { %v2382_v34 = vpop.permute.xlu1 %106  ;;  %v2384_v35 = vpop.permute.xlu0 %104 }
  0xba   :  { %v186_v36 = vpop.permute.xlu1 %185  ;;  %v184_v37 = vpop.permute.xlu0 %183 }
  0xbb   :  { %v212_v13 = vsel %vm211_vm2, %v184_v37, %v186_v36  ;;  %v143_v37 = vadd.f32 %v117_v24, %v2260_v0 }
  0xbc   :  { %v2460_v25 = vadd.f32 %v212_v13, %v141_v22 }
  0xbe   :  { %v2386_v38 = vpop.permute.xlu1 %189  ;;  %v188_v39 = vpop.permute.xlu0 %187 }
  0xbf   :  { %v214_v27 = vsel %vm211_vm2, %v188_v39, %v2386_v38 }
  0xc2   :  { %v2388_v40 = vpop.permute.xlu1 %199  ;;  %v2390_v41 = vpop.permute.xlu0 %197 }
  0xc6   :  { %v2392_v42 = vpop.permute.xlu1 %203  ;;  %v2394_v43 = vpop.permute.xlu0 %201 }
  0xca   :  { %v255_v44 = vpop.permute.xlu1 %254  ;;  %v253_v45 = vpop.permute.xlu0 %252 }
  0xcb   :  { %v2397_v46 = vsub.f32 %v2262_v1, %v253_v45  ;;  %v281_v47 = vsel %vm280_vm0, %v253_v45, %v255_v44  ;;  %v122_v45 = vsel %vm114_vm1, %v2378_v32, %v2384_v35 }
  0xcc   :  { %v2403_v50 = vsub.f32 %v2270_v3, %v281_v47  ;;  %v213_v47 = vsel %vm211_vm2, %v186_v36, %v188_v39  ;;  %v218_v39 = vsel %vm211_vm2, %v2390_v41, %v2388_v40 }
  0xcd   :  { %424 = vrot.lane.b32.xlu0 %v2397_v46, %s2177_s29 }
  0xce   :  { %v259_v48 = vpop.permute.xlu1 %258  ;;  %v257_v49 = vpop.permute.xlu0 %256 }
  0xcf   :  { %v283_v51 = vsel %vm280_vm0, %v257_v49, %v259_v48  ;;  %v282_v56 = vsel %vm280_vm0, %v255_v44, %v257_v49  ;;  %v116_v44 = vsel %vm114_vm1, %v2376_v31, %v2372_v28  ;;  %v121_v28 = vsel %vm114_vm1, %v2380_v33, %v2378_v32 }
  0xd0   :  { %v2414_v55 = vsub.f32 %v2268_v2, %v283_v51  ;;  %v2423_v60 = vsub.f32 %v2260_v0, %v282_v56  ;;  %v142_v49 = vadd.f32 %v116_v44, %v2270_v3  ;;  %v219_v51 = vsel %vm211_vm2, %v2388_v40, %v2394_v43 }
  0xd1   :  { %426 = vrot.lane.b32.xlu0 %v2403_v50, %s2177_s29  ;;  %v149_v31 = vadd.f32 %v122_v45, %v2272_v4  ;;  %v123_v32 = vsel %vm114_vm1, %v2384_v35, %v2382_v34  ;;  %v220_v40 = vsel %vm211_vm2, %v2394_v43, %v2392_v42  ;;  %v493_v45 = vmul.f32 2.0, %v2397_v46 }
  0xd2   :  { %v267_v52 = vpop.permute.xlu1 %266  ;;  %v2408_v53 = vpop.permute.xlu0 %260  ;;  %v2495_v36 = vadd.f32 %v213_v47, %v142_v49  ;;  %v495_v9 = vmul.f32 2.0, %v2423_v60 }
  0xd3   :  { %v2411_v54 = vsub.f32 %v2278_v5, %v267_v52  ;;  %v284_v61 = vsel %vm280_vm0, %v259_v48, %v2408_v53  ;;  %v2479_v48 = vadd.f32 %v214_v27, %v143_v37  ;;  %v2500_v56 = vadd.f32 %v219_v51, %v149_v31 }
  0xd4   :  { %v2439_v11 = vsub.f32 %v2316_v16, %v284_v61  ;;  %v150_v61 = vadd.f32 %v123_v32, %v2286_v7 }
  0xd5   :  { %438 = vrot.lane.b32.xlu1 %v2411_v54, %s2177_s29  ;;  %430 = vrot.lane.b32.xlu0 %v2414_v55, %s2177_s29 }
  0xd6   :  { %v269_v57 = vpop.permute.xlu0 %268  ;;  %v271_v58 = vpop.permute.xlu1 %270  ;;  %v497_v22 = vmul.f32 2.0, %v2439_v11 }
  0xd7   :  { %v287_v59 = vsel %vm280_vm0, %v267_v52, %v269_v57  ;;  %v288_v63 = vsel %vm280_vm0, %v269_v57, %v271_v58  ;;  %v148_v57 = vadd.f32 %v121_v28, %v2278_v5 }
  0xd8   :  { %v2428_v62 = vsub.f32 %v2272_v4, %v287_v59  ;;  %v2450_v15 = vsub.f32 %v2286_v7, %v288_v63  ;;  %v494_v59 = vmul.f32 2.0, %v2403_v50  ;;  %v2520_v63 = vadd.f32 %v220_v40, %v150_v61 }
  0xd9   :  { %428 = vrot.lane.b32.xlu1 %v2423_v60, %s2177_s29  ;;  %v2510_v33 = vadd.f32 %v218_v39, %v148_v57  ;;  %v500_v61 = vmul.f32 2.0, %v2411_v54 }
  0xda   :  { %440 = vrot.lane.b32.xlu0 %v2428_v62, %s2177_s29  ;;  %v273_v8 = vpop.permute.xlu0 %272  ;;  %v2445_v14 = vpop.permute.xlu1 %274  ;;  %v502_v44 = vmul.f32 2.0, %v2450_v15 }
  0xdb   :  { %v289_v10 = vsel %vm280_vm0, %v271_v58, %v273_v8  ;;  %v290_v23 = vsel %vm280_vm0, %v273_v8, %v2445_v14  ;;  %v496_v8 = vmul.f32 2.0, %v2414_v55 }
  0xdc   :  { %v2442_v12 = vsub.f32 %v2284_v6, %v289_v10  ;;  %v2467_v29 = vsub.f32 %v2326_v17, %v290_v23  ;;  %v501_v10 = vmul.f32 2.0, %v2428_v62 }
  0xdd   :  { %432 = vrot.lane.b32.xlu1 %v2439_v11, %s2177_s29 }
  0xde   :  { %444 = vrot.lane.b32.xlu0 %v2442_v12, %s2177_s29  ;;  %v95_v26 = vpop.permute.xlu0 %94  ;;  %v97_v58 = vpop.permute.xlu1 %96  ;;  %v503_v24 = vmul.f32 2.0, %v2442_v12 }
  0xdf   :  { %v118_v27 = vsel %vm114_vm1, %v2374_v30, %v95_v26  ;;  %v504_v30 = vmul.f32 2.0, %v2467_v29  ;;  %v119_v31 = vsel %vm114_vm1, %v95_v26, %v97_v58 }
  0xe0   :  { %v144_v51 = vadd.f32 %v118_v27, %v2268_v2 }
  0xe1   :  { %442 = vrot.lane.b32.xlu1 %v2450_v15, %s2177_s29 }
  0xe2   :  { %333 = vrot.lane.b32.xlu0 %v2460_v25, %s2178_s30  ;;  %v2491_v52 = vpop.permute.xlu0 %98  ;;  %v109_v35 = vpop.permute.xlu1 %108 }
  0xe3   :  { %v120_v47 = vsel %vm114_vm1, %v97_v58, %v2491_v52 }
  0xe4   :  { %v146_v39 = vadd.f32 %v120_v47, %v2332_v18 }
  0xe5   :  { %446 = vrot.lane.b32.xlu1 %v2467_v29, %s2177_s29 }
  0xe6   :  { %337 = vrot.lane.b32.xlu0 %v2479_v48, %s2178_s30  ;;  %v111_v41 = vpop.permute.xlu0 %110  ;;  %v2528_v13 = vpop.permute.xlu1 %112 }
  0xe7   :  { %v125_v32 = vsel %vm114_vm1, %v109_v35, %v111_v41 }
  0xe8   :  { %v152_v26 = vadd.f32 %v125_v32, %v2326_v17 }
  0xe9   :  { %335 = vrot.lane.b32.xlu1 %v2495_v36, %s2178_s30 }
  0xea   :  { %347 = vrot.lane.b32.xlu0 %v2500_v56, %s2178_s30  ;;  %v192_v43 = vpop.permute.xlu0 %191  ;;  %v194_v37 = vpop.permute.xlu1 %193 }
  0xeb   :  { %v215_v49 = vsel %vm211_vm2, %v2386_v38, %v192_v43  ;;  %v216_v58 = vsel %vm211_vm2, %v192_v43, %v194_v37  ;;  %v126_v43 = vsel %vm114_vm1, %v111_v41, %v2528_v13 }
  0xec   :  { %v2552_v57 = vadd.f32 %v215_v49, %v144_v51  ;;  %v153_v41 = vadd.f32 %v126_v43, %v2346_v21 }
  0xed   :  { %345 = vrot.lane.b32.xlu1 %v2510_v33, %s2178_s30 }
  0xee   :  { %523 = vrot.lane.b32.xlu0 %v494_v59, %s2179_s5  ;;  %v2533_v23 = vpop.permute.xlu0 %195  ;;  %v206_v40 = vpop.permute.xlu1 %205  ;;  %v145_v59 = vadd.f32 %v119_v31, %v2316_v16 }
  0xef   :  { %v217_v38 = vsel %vm211_vm2, %v194_v37, %v2533_v23  ;;  %v221_v37 = vsel %vm211_vm2, %v2392_v42, %v206_v40 }
  0xf0   :  { %v2574_v27 = vadd.f32 %v216_v58, %v145_v59 }
  0xf1   :  { %349 = vrot.lane.b32.xlu1 %v2520_v63, %s2178_s30 }
  0xf2   :  { %527 = vrot.lane.b32.xlu0 %v496_v8, %s2179_s5  ;;  %v208_v28 = vpop.permute.xlu0 %207 }
  0xf5   :  { %525 = vrot.lane.b32.xlu1 %v495_v9, %s2179_s5  ;;  %v2564_v9 = vadd.f32 %v217_v38, %v146_v39 }
  0xf6   :  { %537 = vrot.lane.b32.xlu0 %v501_v10, %s2179_s5  ;;  %v263_v8 = vpop.permute.xlu0 %262  ;;  %v222_v10 = vsel %vm211_vm2, %v206_v40, %v208_v28 }
  0xf7   :  { %v285_v47 = vsel %vm280_vm0, %v2408_v53, %v263_v8 }
  0xf8   :  { %v2595_v51 = vsub.f32 %v2332_v18, %v285_v47 }
  0xf9   :  { %529 = vrot.lane.b32.xlu1 %v497_v22, %s2179_s5  ;;  %v2567_v22 = vpop.permute.xlu1 %209 }
  0xfa   :  { %541 = vrot.lane.b32.xlu0 %v503_v24, %s2179_s5  ;;  %v124_v24 = vsel %vm114_vm1, %v2382_v34, %v109_v35  ;;  %v277_v35 = vpop.permute.xlu0 %276  ;;  %v223_v42 = vsel %vm211_vm2, %v208_v28, %v2567_v22  ;;  %v498_v40 = vmul.f32 2.0, %v2595_v51 }
  0xfb   :  { %v291_v53 = vsel %vm280_vm0, %v2445_v14, %v277_v35  ;;  %v2604_v31 = vadd.f32 %v223_v42, %v153_v41 }
  0xfc   :  { %v2607_v32 = vsub.f32 %v2346_v21, %v291_v53 }
  0xfd   :  { %539 = vrot.lane.b32.xlu1 %v502_v44, %s2179_s5  ;;  %v2580_v44 = vadd.f32 %v222_v10, %v152_v26  ;;  %v265_v34 = vpop.permute.xlu1 %264 }
  0xfe   :  { %521 = vrot.lane.b32.xlu0 %v493_v45, %s2179_s5  ;;  %v151_v45 = vadd.f32 %v124_v24, %v2284_v6  ;;  %v505_v59 = vmul.f32 2.0, %v2607_v32 }
 0x100   :  { %v2590_v49 = vadd.f32 %v221_v37, %v151_v45 }
 0x101   :  { %543 = vrot.lane.b32.xlu1 %v504_v30, %s2179_s5  ;;  %v286_v30 = vsel %vm280_vm0, %v263_v8, %v265_v34  ;;  %v279_v39 = vpop.permute.xlu1 %278 }
 0x102   :  { %339 = vrot.lane.b32.xlu0 %v2552_v57, %s2178_s30  ;;  %v2610_v28 = vsub.f32 %v2338_v19, %v286_v30  ;;  %v292_v14 = vsel %vm280_vm0, %v277_v35, %v279_v39 }
 0x103   :  { %v2619_v38 = vsub.f32 %v2344_v20, %v292_v14 }
 0x105   :  { %535 = vrot.lane.b32.xlu1 %v500_v61, %s2179_s5  ;;  %v499_v61 = vmul.f32 2.0, %v2610_v28  ;;  %v506_v26 = vmul.f32 2.0, %v2619_v38 }
 0x106   :  { %343 = vrot.lane.b32.xlu0 %v2564_v9, %s2178_s30 }
 0x109   :  { %341 = vrot.lane.b32.xlu1 %v2574_v27, %s2178_s30 }
 0x10a   :  { %353 = vrot.lane.b32.xlu0 %v2580_v44, %s2178_s30 }
 0x10d   :  { %351 = vrot.lane.b32.xlu1 %v2590_v49, %s2178_s30 }
 0x10e   :  { %434 = vrot.lane.b32.xlu0 %v2595_v51, %s2177_s29 }
 0x111   :  { %355 = vrot.lane.b32.xlu1 %v2604_v31, %s2178_s30 }
 0x112   :  { %448 = vrot.lane.b32.xlu0 %v2607_v32, %s2177_s29 }
 0x115   :  { %436 = vrot.lane.b32.xlu1 %v2610_v28, %s2177_s29 }
 0x116   :  { %531 = vrot.lane.b32.xlu0 %v498_v40, %s2179_s5 }
 0x119   :  { %450 = vrot.lane.b32.xlu1 %v2619_v38, %s2177_s29 }
 0x11a   :  { %545 = vrot.lane.b32.xlu0 %v505_v59, %s2179_s5 }
 0x11d   :  { %533 = vrot.lane.b32.xlu1 %v499_v61, %s2179_s5 }
 0x121   :  { %547 = vrot.lane.b32.xlu1 %v506_v26, %s2179_s5 }
 0x13f   :  { %v2632_v58 = vpop.permute.xlu0 %424 }
 0x143   :  { %v2634_v8 = vpop.permute.xlu0 %426 }
 0x147   :  { %v2636_v10 = vpop.permute.xlu1 %438  ;;  %v431_v24 = vpop.permute.xlu0 %430 }
 0x14b   :  { %v429_v43 = vpop.permute.xlu1 %428 }
 0x14c   :  { %v2638_v37 = vpop.permute.xlu0 %440 }
 0x14f   :  { %v2640_v45 = vpop.permute.xlu1 %432 }
 0x150   :  { %v2642_v47 = vpop.permute.xlu0 %444 }
 0x153   :  { %v443_v34 = vpop.permute.xlu1 %442 }
 0x154   :  { %v334_v35 = vpop.permute.xlu0 %333 }
 0x155   :  { %v382_v53 = vsub.f32 %v2460_v25, %v334_v35 }
 0x157   :  { %v2644_v41 = vpop.permute.xlu1 %446  ;;  %v396_v26 = vmul.f32 0.125, %v382_v53 }
 0x158   :  { %v2646_v42 = vpop.permute.xlu0 %337 }
 0x15b   :  { %v336_v30 = vpop.permute.xlu1 %335 }
 0x15c   :  { %v358_v39 = vsel %vm357_vm3, %v334_v35, %v336_v30  ;;  %v359_v14 = vsel %vm357_vm3, %v336_v30, %v2646_v42  ;;  %v348_v40 = vpop.permute.xlu0 %347 }
 0x15d   :  { %v383_v59 = vsub.f32 %v2495_v36, %v358_v39  ;;  %v384_v61 = vsub.f32 %v2479_v48, %v359_v14  ;;  %v454_v48 = vsel %vm452_vm4, %v2634_v8, %v429_v43  ;;  %v455_v36 = vsel %vm452_vm4, %v429_v43, %v431_v24 }
 0x15f   :  { %v397_v21 = vmul.f32 0.125, %v383_v59  ;;  %v346_v18 = vpop.permute.xlu1 %345  ;;  %v398_v16 = vmul.f32 0.125, %v384_v61 }
 0x160   :  { %v363_v6 = vsel %vm357_vm3, %v346_v18, %v348_v40  ;;  %v389_v2 = vsub.f32 %v2510_v33, %v346_v18  ;;  %v524_v17 = vpop.permute.xlu0 %523 }
 0x161   :  { %v1971_v25 = vpack.i.bf16 %v397_v21, %v396_v26  ;;  %v390_v35 = vsub.f32 %v2500_v56, %v363_v6  ;;  %v480_v6 = vadd.f32 %v454_v48, %v2403_v50  ;;  %v481_v56 = vadd.f32 %v455_v36, %v2423_v60 }
 0x162   :  { %v403_v7 = vmul.f32 0.125, %v389_v2  ;;  %v460_v50 = vsel %vm452_vm4, %v2638_v37, %v443_v34 }
 0x163   :  { %v2657_v30 = vpop.permute.xlu1 %349  ;;  %1972 = vrot.lane.b32.xlu0 %v1971_v25, %s2180_s6  ;;  %v404_v53 = vmul.f32 0.125, %v390_v35 }
 0x164   :  { %v364_v18 = vsel %vm357_vm3, %v348_v40, %v2657_v30  ;;  %v528_v33 = vpop.permute.xlu0 %527  ;;  %v1976_v21 = vpack.i.bf16 %v403_v7, %v398_v16  ;;  %v456_v16 = vsel %vm452_vm4, %v431_v24, %v2640_v45  ;;  %v487_v24 = vadd.f32 %v460_v50, %v2428_v62 }
 0x165   :  { %v391_v2 = vsub.f32 %v2520_v63, %v364_v18  ;;  %v482_v48 = vadd.f32 %v456_v16, %v2414_v55  ;;  %v453_v62 = vsel %vm452_vm4, %v2632_v58, %v2634_v8 }
 0x166   :  { %1977 = vrot.lane.b32.xlu1 %v1976_v21, %s2180_s6  ;;  %v461_v21 = vsel %vm452_vm4, %v443_v34, %v2642_v47 }
 0x167   :  { %v405_v39 = vmul.f32 0.125, %v391_v2  ;;  %v526_v14 = vpop.permute.xlu1 %525 }
 0x168   :  { %v551_v59 = vsel %vm549_vm5, %v524_v17, %v526_v14  ;;  %v552_v43 = vsel %vm549_vm5, %v526_v14, %v528_v33  ;;  %v538_v61 = vpop.permute.xlu0 %537 }
 0x169   :  { %v577_v40 = vadd.f32 %v551_v59, %v480_v6  ;;  %v578_v26 = vadd.f32 %v552_v43, %v481_v56  ;;  %v1981_v7 = vpack.i.bf16 %v405_v39, %v404_v53  ;;  %v462_v56 = vsel %vm452_vm4, %v2642_v47, %v2644_v41 }
 0x16a   :  { %v488_v39 = vadd.f32 %v461_v21, %v2450_v15  ;;  %v489_v34 = vadd.f32 %v462_v56, %v2442_v12  ;;  %v459_v47 = vsel %vm452_vm4, %v2636_v10, %v2638_v37  ;;  %v147_v12 = vadd.f32 %v2491_v52, %v2338_v19 }
 0x16b   :  { %v591_v63 = vmul.f32 0.125, %v577_v40  ;;  %v592_v25 = vmul.f32 0.125, %v578_v26  ;;  %v2673_v18 = vpop.permute.xlu1 %529  ;;  %1982 = vrot.lane.b32.xlu0 %v1981_v7, %s2180_s6 }
 0x16c   :  { %v553_v60 = vsel %vm549_vm5, %v528_v33, %v2673_v18  ;;  %v542_v35 = vpop.permute.xlu0 %541  ;;  %v244_v21 = vadd.f32 %v2533_v23, %v147_v12  ;;  %v154_v23 = vadd.f32 %v2528_v13, %v2344_v20 }
 0x16d   :  { %v1986_v36 = vpack.i.bf16 %v592_v25, %v591_v63  ;;  %v579_v2 = vadd.f32 %v553_v60, %v482_v48  ;;  %v479_v63 = vadd.f32 %v453_v62, %v2397_v46  ;;  %v486_v25 = vadd.f32 %v459_v47, %v2411_v54 }
 0x16e   :  { %v251_v13 = vadd.f32 %v2567_v22, %v154_v23 }
 0x16f   :  { %v540_v6 = vpop.permute.xlu1 %539  ;;  %1987 = vrot.lane.b32.xlu1 %v1986_v36, %s2181_s7  ;;  %v593_v59 = vmul.f32 0.125, %v579_v2 }
 0x170   :  { %v557_v33 = vsel %vm549_vm5, %v538_v61, %v540_v6  ;;  %v558_v53 = vsel %vm549_vm5, %v540_v6, %v542_v35  ;;  %v522_v55 = vpop.permute.xlu0 %521 }
 0x171   :  { %v584_v14 = vadd.f32 %v557_v33, %v487_v24  ;;  %v585_v43 = vadd.f32 %v558_v53, %v488_v39  ;;  %v550_v7 = vsel %vm549_vm5, %v522_v55, %v524_v17 }
 0x172   :  { %v576_v60 = vadd.f32 %v550_v7, %v479_v63 }
 0x173   :  { %v598_v40 = vmul.f32 0.125, %v584_v14  ;;  %v2695_v26 = vpop.permute.xlu1 %543  ;;  %v599_v50 = vmul.f32 0.125, %v585_v43 }
 0x174   :  { %v559_v15 = vsel %vm549_vm5, %v542_v35, %v2695_v26  ;;  %v340_v16 = vpop.permute.xlu0 %339  ;;  %v590_v24 = vmul.f32 0.125, %v576_v60 }
 0x175   :  { %v586_v58 = vadd.f32 %v559_v15, %v489_v34  ;;  %v1991_v8 = vpack.i.bf16 %v598_v40, %v593_v59  ;;  %v360_v17 = vsel %vm357_vm3, %v2646_v42, %v340_v16 }
 0x176   :  { %v385_v52 = vsub.f32 %v2552_v57, %v360_v17 }
 0x177   :  { %v600_v48 = vmul.f32 0.125, %v586_v58  ;;  %v536_v36 = vpop.permute.xlu1 %535  ;;  %1992 = vrot.lane.b32.xlu0 %v1991_v8, %s2181_s7 }
 0x178   :  { %v556_v10 = vsel %vm549_vm5, %v536_v36, %v538_v61  ;;  %v344_v37 = vpop.permute.xlu0 %343  ;;  %v399_v39 = vmul.f32 0.125, %v385_v52 }
 0x179   :  { %v583_v46 = vadd.f32 %v556_v10, %v486_v25  ;;  %v1996_v35 = vpack.i.bf16 %v600_v48, %v599_v50  ;;  %v388_v6 = vsub.f32 %v244_v21, %v344_v37 }
 0x17b   :  { %v597_v54 = vmul.f32 0.125, %v583_v46  ;;  %v342_v2 = vpop.permute.xlu1 %341  ;;  %1997 = vrot.lane.b32.xlu1 %v1996_v35, %s2181_s7  ;;  %v402_v34 = vmul.f32 0.125, %v388_v6 }
 0x17c   :  { %v361_v56 = vsel %vm357_vm3, %v340_v16, %v342_v2  ;;  %v362_v33 = vsel %vm357_vm3, %v342_v2, %v344_v37  ;;  %v354_v42 = vpop.permute.xlu0 %353 }
 0x17d   :  { %v386_v61 = vsub.f32 %v2574_v27, %v361_v56  ;;  %v387_v53 = vsub.f32 %v2564_v9, %v362_v33  ;;  %v2001_v55 = vpack.i.bf16 %v597_v54, %v590_v24 }
 0x17f   :  { %v400_v57 = vmul.f32 0.125, %v386_v61  ;;  %v401_v14 = vmul.f32 0.125, %v387_v53  ;;  %v352_v62 = vpop.permute.xlu1 %351  ;;  %2002 = vrot.lane.b32.xlu0 %v2001_v55, %s2181_s7 }
 0x180   :  { %v365_v59 = vsel %vm357_vm3, %v2657_v30, %v352_v62  ;;  %v366_v43 = vsel %vm357_vm3, %v352_v62, %v354_v42  ;;  %v435_v40 = vpop.permute.xlu0 %434 }
 0x181   :  { %v392_v27 = vsub.f32 %v2590_v49, %v365_v59  ;;  %v393_v9 = vsub.f32 %v2580_v44, %v366_v43  ;;  %v2006_v47 = vpack.i.bf16 %v400_v57, %v399_v39  ;;  %v2011_v7 = vpack.i.bf16 %v402_v34, %v401_v14  ;;  %v3219_v34 = vld [vmem:[#allocation14_spill] sm:$0xff]  ;;  %v3220_v43 = vld [vmem:[#allocation15_spill] sm:$0xff] }
 0x182   :  { %v457_v36 = vsel %vm452_vm4, %v2640_v45, %v435_v40  ;;  %v743_v14 = vpack.c.bf16 %v2272_v4, %v2270_v3  ;;  %v744_v59 = vpack.c.bf16 %v3219_v34, %v2260_v0  ;;  %v3222_v4 = vld [vmem:[#allocation12_spill] sm:$0xff] }
 0x183   :  { %v406_v15 = vmul.f32 0.125, %v392_v27  ;;  %v407_v16 = vmul.f32 0.125, %v393_v9  ;;  %v356_v63 = vpop.permute.xlu1 %355  ;;  %2007 = vrot.lane.b32.xlu1 %v2006_v47, %s2180_s6  ;;  %2012 = vrot.lane.b32.xlu0 %v2011_v7, %s2180_s6  ;;  %v483_v35 = vadd.f32 %v457_v36, %v2439_v11  ;;  %v3223_v27 = vld [vmem:[#allocation13_spill] sm:$0xff]  ;;  %v3225_v47 = vld [vmem:[#allocation18_spill] sm:$0xff] }
 0x184   :  { %v367_v58 = vsel %vm357_vm3, %v354_v42, %v356_v63  ;;  %v395_v8 = vsub.f32 %v251_v13, %v356_v63  ;;  %v449_v30 = vpop.permute.xlu0 %448  ;;  %v745_v9 = vpack.c.bf16 %v3223_v27, %v3222_v4 }
 0x185   :  { %v394_v12 = vsub.f32 %v2604_v31, %v367_v58  ;;  %v2016_v49 = vpack.i.bf16 %v407_v16, %v406_v15  ;;  %v463_v60 = vsel %vm452_vm4, %v2644_v41, %v449_v30 }
 0x186   :  { %v409_v25 = vmul.f32 0.125, %v395_v8  ;;  %v490_v10 = vadd.f32 %v463_v60, %v2467_v29 }
 0x187   :  { %v408_v44 = vmul.f32 0.125, %v394_v12  ;;  %v437_v50 = vpop.permute.xlu1 %436  ;;  %2017 = vrot.lane.b32.xlu1 %v2016_v49, %s2180_s6 }
 0x188   :  { %v532_v22 = vpop.permute.xlu0 %531  ;;  %v458_v31 = vsel %vm452_vm4, %v435_v40, %v437_v50  ;;  %v485_v21 = vadd.f32 %v437_v50, %v2610_v28  ;;  %v3221_v40 = vld [vmem:[#allocation16_spill] sm:$0xff] }
 0x189   :  { %v2021_v48 = vpack.i.bf16 %v409_v25, %v408_v44  ;;  %v554_v37 = vsel %vm549_vm5, %v2673_v18, %v532_v22  ;;  %v484_v45 = vadd.f32 %v458_v31, %v2595_v51  ;;  %v746_v3 = vpack.c.bf16 %v3221_v40, %v3220_v43 }
 0x18a   :  { %v580_v52 = vadd.f32 %v554_v37, %v483_v35  ;;  %v2183_v31 = vmov 0  }
 0x18b   :  { %v451_v17 = vpop.permute.xlu1 %450  ;;  %2022 = vrot.lane.b32.xlu0 %v2021_v48, %s2180_s6  ;;  %916 = vmatprep.mubr.bf16.mxu0 %v2183_v31 }
 0x18c   :  { %v546_v46 = vpop.permute.xlu0 %545  ;;  %v464_v29 = vsel %vm452_vm4, %v449_v30, %v451_v17  ;;  %v492_v18 = vadd.f32 %v451_v17, %v2619_v38  ;;  %v594_v42 = vmul.f32 0.125, %v580_v52  ;;  %969 = vmatprep.mubr.bf16.mxu1 %v2183_v31 }
 0x18d   :  { %v560_v41 = vsel %vm549_vm5, %v2695_v26, %v546_v46  ;;  %v491_v26 = vadd.f32 %v464_v29, %v2607_v32  ;;  %v742_v32 = vpack.c.bf16 %v2278_v5, %v2262_v1  ;;  %v748_v1 = vpack.c.bf16 %v2344_v20, %v2338_v19  ;;  %v3224_v5 = vld [vmem:[#allocation17_spill] sm:$0xff] }
 0x18e   :  { %v587_v24 = vadd.f32 %v560_v41, %v490_v10  ;;  %v747_v0 = vpack.c.bf16 %v3225_v47, %v3224_v5 }
 0x18f   :  { %v534_v54 = vpop.permute.xlu1 %533 }
 0x190   :  { %v555_v2 = vsel %vm549_vm5, %v532_v22, %v534_v54  ;;  %v582_v6 = vadd.f32 %v534_v54, %v485_v21  ;;  %v601_v33 = vmul.f32 0.125, %v587_v24 }
 0x191   :  { %v581_v56 = vadd.f32 %v555_v2, %v484_v45 }
 0x192   :  { %v596_v11 = vmul.f32 0.125, %v582_v6 }
 0x193   :  { %v595_v61 = vmul.f32 0.125, %v581_v56  ;;  %v548_v28 = vpop.permute.xlu1 %547 }
 0x194   :  { %v561_v53 = vsel %vm549_vm5, %v546_v46, %v548_v28  ;;  %v589_v51 = vadd.f32 %v548_v28, %v492_v18  ;;  %v2031_v55 = vpack.i.bf16 %v601_v33, %v596_v11 }
 0x195   :  { %v588_v23 = vadd.f32 %v561_v53, %v491_v26  ;;  %v2026_v39 = vpack.i.bf16 %v595_v61, %v594_v42 }
 0x196   :  { %v603_v57 = vmul.f32 0.125, %v589_v51  ;;  %2032 = vrot.lane.b32.xlu0 %v2031_v55, %s2181_s7 }
 0x197   :  { %v602_v38 = vmul.f32 0.125, %v588_v23  ;;  %2027 = vrot.lane.b32.xlu1 %v2026_v39, %s2181_s7 }
 0x199   :  { %v2036_v62 = vpack.i.bf16 %v603_v57, %v602_v38 }
 0x19a   :  { %800 = vrot.lane.b32.xlu0 %v743_v14, %s2182_s8 }
 0x19b   :  { %2037 = vrot.lane.b32.xlu1 %v2036_v62, %s2181_s7 }
 0x19e   :  { %798 = vrot.lane.b32.xlu0 %v742_v32, %s2182_s8 }
 0x19f   :  { %802 = vrot.lane.b32.xlu1 %v744_v59, %s2182_s8 }
 0x1a2   :  { %806 = vrot.lane.b32.xlu0 %v746_v3, %s2182_s8 }
 0x1a3   :  { %804 = vrot.lane.b32.xlu1 %v745_v9, %s2182_s8 }
 0x1a6   :  { %810 = vrot.lane.b32.xlu0 %v748_v1, %s2182_s8 }
 0x1a7   :  { %808 = vrot.lane.b32.xlu1 %v747_v0, %s2182_s8 }
 0x1d5   :  { %v1973_v13 = vpop.permute.xlu0 %1972 }
 0x1d6   :  { %v1974_v15 = vunpack.i.l.bf16 %v1973_v13  ;;  %v1975_v58 = vunpack.i.h.bf16 %v1973_v13 }
 0x1d8   :  { %v1978_v7 = vpop.permute.xlu1 %1977  ;;  %v647_v12 = vsel %vm646_vm6, %v1974_v15, %v1975_v58 }
 0x1d9   :  { %v1980_v16 = vunpack.i.h.bf16 %v1978_v7  ;;  %v1979_v8 = vunpack.i.l.bf16 %v1978_v7 }
 0x1db   :  { %v749_v63 = vpack.c.bf16 %v1980_v16, %v1974_v15  ;;  %v648_v49 = vsel %vm646_vm6, %v1975_v58, %v1979_v8 }
 0x1dd   :  { %v1983_v30 = vpop.permute.xlu0 %1982  ;;  %812 = vrot.lane.b32.xlu1 %v749_v63, %s2182_s8 }
 0x1de   :  { %v1985_v19 = vunpack.i.h.bf16 %v1983_v30  ;;  %v1984_v20 = vunpack.i.l.bf16 %v1983_v30 }
 0x1e0   :  { %v653_v25 = vsel %vm646_vm6, %v1980_v16, %v1984_v20  ;;  %v654_v44 = vsel %vm646_vm6, %v1984_v20, %v1985_v19 }
 0x1e1   :  { %v751_v50 = vpack.c.bf16 %v654_v44, %v648_v49  ;;  %v750_v22 = vpack.c.bf16 %v653_v25, %v647_v12  ;;  %v1988_v60 = vpop.permute.xlu1 %1987 }
 0x1e2   :  { %v1990_v36 = vunpack.i.h.bf16 %v1988_v60  ;;  %v1989_v17 = vunpack.i.l.bf16 %v1988_v60 }
 0x1e3   :  { %816 = vrot.lane.b32.xlu0 %v751_v50, %s2182_s8  ;;  %814 = vrot.lane.b32.xlu1 %v750_v22, %s2182_s8 }
 0x1e4   :  { %v717_v21 = vsel %vm715_vm7, %v1989_v17, %v1990_v36 }
 0x1e9   :  { %v2782_v48 = vpop.permute.xlu0 %1992 }
 0x1ea   :  { %v1994_v10 = vunpack.i.l.bf16 %v2782_v48  ;;  %v1995_v46 = vunpack.i.h.bf16 %v2782_v48 }
 0x1ec   :  { %v718_v24 = vsel %vm715_vm7, %v1990_v36, %v1994_v10 }
 0x1ed   :  { %v1998_v37 = vpop.permute.xlu1 %1997 }
 0x1ee   :  { %v2000_v35 = vunpack.i.h.bf16 %v1998_v37  ;;  %v1999_v41 = vunpack.i.l.bf16 %v1998_v37 }
 0x1f0   :  { %v723_v45 = vsel %vm715_vm7, %v1995_v46, %v1999_v41  ;;  %v724_v52 = vsel %vm715_vm7, %v1999_v41, %v2000_v35 }
 0x1f1   :  { %v2003_v54 = vpop.permute.xlu0 %2002  ;;  %v757_v29 = vpack.c.bf16 %v723_v45, %v717_v21  ;;  %v758_v2 = vpack.c.bf16 %v724_v52, %v718_v24 }
 0x1f2   :  { %v2005_v6 = vunpack.i.h.bf16 %v2003_v54  ;;  %v2004_v56 = vunpack.i.l.bf16 %v2003_v54 }
 0x1f3   :  { %828 = vrot.lane.b32.xlu0 %v757_v29, %s2182_s8  ;;  %830 = vrot.lane.b32.xlu1 %v758_v2, %s2182_s8 }
 0x1f4   :  { %v716_v18 = vsel %vm715_vm7, %v2004_v56, %v1989_v17  ;;  %v722_v33 = vsel %vm715_vm7, %v2005_v6, %v1995_v46 }
 0x1f5   :  { %v2008_v11 = vpop.permute.xlu1 %2007  ;;  %v756_v42 = vpack.c.bf16 %v722_v33, %v716_v18  ;;  %v2013_v28 = vpop.permute.xlu0 %2012 }
 0x1f6   :  { %v2010_v26 = vunpack.i.h.bf16 %v2008_v11  ;;  %v2009_v61 = vunpack.i.l.bf16 %v2008_v11  ;;  %v2015_v23 = vunpack.i.h.bf16 %v2013_v28  ;;  %v2014_v39 = vunpack.i.l.bf16 %v2013_v28 }
 0x1f7   :  { %826 = vrot.lane.b32.xlu0 %v756_v42, %s2182_s8 }
 0x1f8   :  { %v649_v57 = vsel %vm646_vm6, %v1979_v8, %v2009_v61  ;;  %v650_v14 = vsel %vm646_vm6, %v2009_v61, %v2010_v26  ;;  %v651_v3 = vsel %vm646_vm6, %v2010_v26, %v2014_v39  ;;  %v652_v4 = vsel %vm646_vm6, %v2014_v39, %v2015_v23  ;;  %v2056_v61 = vld [vmem:[#allocation7] sm:$0xff]   ;;  %v2057_v39 = vld [vmem:[#allocation7 + $0x8] sm:$0xff]  }
 0x1f9   :  { %v2018_v53 = vpop.permute.xlu1 %2017 }
 0x1fa   :  { %v2020_v51 = vunpack.i.h.bf16 %v2018_v53  ;;  %v2019_v55 = vunpack.i.l.bf16 %v2018_v53 }
 0x1fc   :  { %v655_v38 = vsel %vm646_vm6, %v1985_v19, %v2019_v55  ;;  %v656_v62 = vsel %vm646_vm6, %v2019_v55, %v2020_v51 }
 0x1fd   :  { %v2023_v32 = vpop.permute.xlu0 %2022  ;;  %v753_v34 = vpack.c.bf16 %v656_v62, %v650_v14  ;;  %v752_v59 = vpack.c.bf16 %v655_v38, %v649_v57 }
 0x1fe   :  { %v2025_v43 = vunpack.i.h.bf16 %v2023_v32  ;;  %v2024_v40 = vunpack.i.l.bf16 %v2023_v32 }
 0x1ff   :  { %820 = vrot.lane.b32.xlu0 %v753_v34, %s2182_s8  ;;  %818 = vrot.lane.b32.xlu1 %v752_v59, %s2182_s8 }
 0x200   :  { %v657_v27 = vsel %vm646_vm6, %v2020_v51, %v2024_v40  ;;  %v658_v9 = vsel %vm646_vm6, %v2024_v40, %v2025_v43 }
 0x201   :  { %v755_v1 = vpack.c.bf16 %v658_v9, %v652_v4  ;;  %v754_v5 = vpack.c.bf16 %v657_v27, %v651_v3 }
 0x203   :  { %824 = vrot.lane.b32.xlu0 %v755_v1, %s2182_s8  ;;  %822 = vrot.lane.b32.xlu1 %v754_v5, %s2182_s8 }
 0x208   :  { %v2033_v47 = vpop.permute.xlu0 %2032 }
 0x209   :  { %v2035_v0 = vunpack.i.h.bf16 %v2033_v47  ;;  %v2028_v13 = vpop.permute.xlu1 %2027  ;;  %v2034_v16 = vunpack.i.l.bf16 %v2033_v47 }
 0x20a   :  { %v2029_v7 = vunpack.i.l.bf16 %v2028_v13  ;;  %v2030_v63 = vunpack.i.h.bf16 %v2028_v13 }
 0x20b   :  { %v725_v15 = vsel %vm715_vm7, %v2000_v35, %v2035_v0 }
 0x20c   :  { %v719_v58 = vsel %vm715_vm7, %v1994_v10, %v2029_v7  ;;  %v801_v8 = vpop.permute.xlu0 %800  ;;  %v720_v49 = vsel %vm715_vm7, %v2029_v7, %v2030_v63  ;;  %v721_v25 = vsel %vm715_vm7, %v2030_v63, %v2034_v16 }
 0x20d   :  { %v2038_v30 = vpop.permute.xlu1 %2037  ;;  %v759_v19 = vpack.c.bf16 %v725_v15, %v719_v58 }
 0x20e   :  { %v2040_v20 = vunpack.i.h.bf16 %v2038_v30  ;;  %v2039_v12 = vunpack.i.l.bf16 %v2038_v30 }
 0x20f   :  { %832 = vrot.lane.b32.xlu1 %v759_v19, %s2182_s8 }
 0x210   :  { %v726_v44 = vsel %vm715_vm7, %v2035_v0, %v2039_v12  ;;  %v727_v50 = vsel %vm715_vm7, %v2039_v12, %v2040_v20  ;;  %v799_v22 = vpop.permute.xlu0 %798  ;;  %v762_v37 = vpack.c.bf16 %v2040_v20, %v2034_v16 }
 0x211   :  { %v760_v60 = vpack.c.bf16 %v726_v44, %v720_v49  ;;  %v761_v48 = vpack.c.bf16 %v727_v50, %v721_v25  ;;  %v803_v36 = vpop.permute.xlu1 %802  ;;  %v841_v10 = vsel %vm840_vm8, %v799_v22, %v801_v8  ;;  %v2058_v22 = vld [vmem:[%s3203_s3] sm:$0xff]   ;;  %s2185_s3 = smov 19  }
 0x212   :  { %v842_v17 = vsel %vm840_vm8, %v801_v8, %v803_v36 }
 0x213   :  { %834 = vrot.lane.b32.xlu0 %v760_v60, %s2182_s8  ;;  %836 = vrot.lane.b32.xlu1 %v761_v48, %s2182_s8 }
 0x214   :  { %884 = vmatprep.subr.bf16.mxu0 %v842_v17  ;;  %v807_v35 = vpop.permute.xlu0 %806 }
 0x215   :  { %v805_v46 = vpop.permute.xlu1 %804  ;;  %885 = vmatpush1.bf16.msra.mxu0 %v841_v10 }
 0x216   :  { %v844_v41 = vsel %vm840_vm8, %v805_v46, %v807_v35  ;;  %v843_v21 = vsel %vm840_vm8, %v803_v36, %v805_v46 }
 0x217   :  { %838 = vrot.lane.b32.xlu0 %v762_v37, %s2182_s8  ;;  %937 = vmatprep.subr.bf16.mxu1 %v844_v41 }
 0x218   :  { %938 = vmatpush1.bf16.msra.mxu1 %v843_v21  ;;  %v811_v45 = vpop.permute.xlu0 %810 }
 0x219   :  { %v809_v24 = vpop.permute.xlu1 %808 }
 0x21a   :  { %v846_v42 = vsel %vm840_vm8, %v809_v24, %v811_v45  ;;  %v845_v28 = vsel %vm840_vm8, %v807_v35, %v809_v24 }
 0x24f   :  { %v813_v52 = vpop.permute.xlu1 %812 }
 0x255   :  { %v817_v54 = vpop.permute.xlu0 %816  ;;  %v815_v29 = vpop.permute.xlu1 %814 }
 0x256   :  { %v848_v2 = vsel %vm840_vm8, %v815_v29, %v817_v54  ;;  %v847_v6 = vsel %vm840_vm8, %v813_v52, %v815_v29 }
 0x257   :  { %886 = vmatprep.subr.bf16.mxu0 %v848_v2 }
 0x258   :  { %887 = vmatpush1.bf16.msra.mxu0 %v847_v6 }
 0x265   :  { %v829_v56 = vpop.permute.xlu0 %828  ;;  %v831_v18 = vpop.permute.xlu1 %830 }
 0x266   :  { %v854_v33 = vsel %vm840_vm8, %v829_v56, %v831_v18 }
 0x267   :  { %888 = vmatprep.subr.bf16.mxu0 %v854_v33 }
 0x269   :  { %v827_v11 = vpop.permute.xlu0 %826 }
 0x26a   :  { %v853_v26 = vsel %vm840_vm8, %v827_v11, %v829_v56 }
 0x26b   :  { %889 = vmatpush1.bf16.msra.mxu0 %v853_v26 }
 0x26c   :  { %990 = vmatprep.subr.bf16.mxu0 %v846_v42 }
 0x26e   :  { %1934 = vmatmul.mubr.msk.bf16.vlgmr.msra.gmra.mrb[0].mxu0 %vm877_vm9, %v2056_v61 }
 0x26f   :  { %991 = vmatpush1.bf16.msra.mxu0 %v845_v28  ;;  %926 = vmatprep.mubr.bf16.mxu0 %v2183_v31 }
 0x271   :  { %v821_v53 = vpop.permute.xlu0 %820  ;;  %v819_v51 = vpop.permute.xlu1 %818 }
 0x272   :  { %v850_v55 = vsel %vm840_vm8, %v819_v51, %v821_v53  ;;  %v849_v23 = vsel %vm840_vm8, %v817_v54, %v819_v51 }
 0x273   :  { %939 = vmatprep.subr.bf16.mxu1 %v850_v55 }
 0x274   :  { %940 = vmatpush1.bf16.msra.mxu1 %v849_v23 }
 0x275   :  { %v825_v57 = vpop.permute.xlu0 %824  ;;  %v823_v14 = vpop.permute.xlu1 %822 }
 0x276   :  { %v852_v38 = vsel %vm840_vm8, %v823_v14, %v825_v57  ;;  %v851_v62 = vsel %vm840_vm8, %v821_v53, %v823_v14  ;;  %1935 = vmatmul.mubr.msk.bf16.gmra.mrb[4].mxu0 %vm877_vm9, %v2057_v39 }
 0x277   :  { %992 = vmatprep.subr.bf16.mxu0 %v852_v38  ;;  %1022 = vmatprep.mubr.bf16.mxu0 %v2183_v31 }
 0x278   :  { %993 = vmatpush1.bf16.msra.mxu0 %v851_v62 }
 0x281   :  { %v833_v32 = vpop.permute.xlu1 %832 }
 0x282   :  { %v855_v43 = vsel %vm840_vm8, %v831_v18, %v833_v32 }
 0x285   :  { %v835_v34 = vpop.permute.xlu0 %834  ;;  %v837_v40 = vpop.permute.xlu1 %836 }
 0x286   :  { %v856_v59 = vsel %vm840_vm8, %v833_v32, %v835_v34  ;;  %v857_v27 = vsel %vm840_vm8, %v835_v34, %v837_v40 }
 0x287   :  { %941 = vmatprep.subr.bf16.mxu1 %v856_v59 }
 0x288   :  { %942 = vmatpush1.bf16.msra.mxu1 %v855_v43 }
 0x289   :  { %v839_v3 = vpop.permute.xlu0 %838 }
 0x28a   :  { %v858_v4 = vsel %vm840_vm8, %v837_v40, %v839_v3 }
 0x28b   :  { %1936 = vmatmul.mubr.msk.bf16.vlgmr.msra.gmra.mrb[0].mxu1 %vm877_vm9, %v2056_v61  ;;  %994 = vmatprep.subr.bf16.mxu0 %v858_v4  ;;  %v1224_v4 = vlaneseq }
 0x28c   :  { %995 = vmatpush1.bf16.msra.mxu0 %v857_v27  ;;  %979 = vmatprep.mubr.bf16.mxu1 %v2183_v31  ;;  %v1219_v27 = vld [vmem:[#allocation5] sm:$0x3f] }
 0x28d   :  { %vm1220_vm11 = vcmp.le.f32.partialorder %v1219_v27, 0.5  ;;  %v2063_v27 = vld [vmem:[#allocation2 + $0x20] sm:$0xff] }
 0x28f   :  { %1938 = vmatmul.mubr.msk.bf16.vlgmr.msra.gmra.mrb[8].mxu0 %vm877_vm9, %v2056_v61 }
 0x290   :  { %1032 = vmatprep.mubr.bf16.mxu0 %v2183_v31 }
 0x293   :  { %1937 = vmatmul.mubr.msk.bf16.gmra.mrb[4].mxu1 %vm877_vm9, %v2057_v39 }
 0x294   :  { %1122 = vmatprep.mubr.bf16.mxu1 %v2183_v31 }
 0x297   :  { %1939 = vmatmul.mubr.msk.bf16.gmra.mrb[12].mxu0 %vm877_vm9, %v2057_v39 }
 0x298   :  { %1208 = vmatprep.mubr.bf16.mxu0 %v2183_v31 }
 0x341   :  { %v918_v9 = vpop.f32.mrb[0].mxu0 }
 0x342   :  { %v1043_v1 = vmax.f32 %v918_v9, 0.0  ;;  %v920_v5 = vpop.f32.mrb[1].mxu0  ;;  %v2857_v9 = vshrl.u32 %v1224_v4, 7 }
 0x343   :  { %v1044_v47 = vmax.f32 %v920_v5, 0.0  ;;  %v922_v0 = vpop.f32.mrb[2].mxu0  ;;  %v2184_v5 = vmov 0.0  }
 0x344   :  { %v1049_v13 = vmax.f32 %v922_v0, 0.0  ;;  %v924_v7 = vpop.f32.mrb[3].mxu0  ;;  %v1230_v0 = vsub.s32 1, %v2857_v9 }
 0x345   :  { %v1050_v15 = vmax.f32 %v924_v7, 0.0 }
 0x346   :  { %v1069_v16 = vpack.c.bf16 %v1049_v13, %v1043_v1  ;;  %v1226_v1 = vsub.s32 0, %v2857_v9 }
 0x347   :  { %v1070_v63 = vpack.c.bf16 %v1050_v15, %v1044_v47  ;;  %v1944_v47 = vsel %vm1220_vm11, 1.0, %v2184_v5 }
 0x348   :  { %v1227_v13 = vrot.slane %v1944_v47, %v1226_v1  ;;  %v1231_v7 = vrot.slane %v1944_v47, %v1230_v0 }
 0x349   :  { %v928_v58 = vpop.f32.mrb[4].mxu0  ;;  %1090 = vmatprep.subr.bf16.mxu1 %v1070_v63 }
 0x34a   :  { %v1055_v8 = vmax.f32 %v928_v58, 0.0  ;;  %v930_v30 = vpop.f32.mrb[5].mxu0  ;;  %1091 = vmatpush1.bf16.msra.mxu1 %v1069_v16 }
 0x34b   :  { %v1056_v19 = vmax.f32 %v930_v30, 0.0  ;;  %v932_v20 = vpop.f32.mrb[6].mxu0 }
 0x34c   :  { %v1061_v12 = vmax.f32 %v932_v20, 0.0  ;;  %v934_v49 = vpop.f32.mrb[7].mxu0 }
 0x34d   :  { %v1062_v25 = vmax.f32 %v934_v49, 0.0  ;;  %v1238_v49 = vsub.s32 3, %v2857_v9 }
 0x34e   :  { %v1075_v44 = vpack.c.bf16 %v1061_v12, %v1055_v8  ;;  %v1234_v12 = vsub.s32 2, %v2857_v9 }
 0x34f   :  { %v1076_v50 = vpack.c.bf16 %v1062_v25, %v1056_v19 }
 0x350   :  { %v1235_v25 = vrot.slane %v1944_v47, %v1234_v12 }
 0x351   :  { %1092 = vmatprep.subr.bf16.mxu1 %v1076_v50  ;;  %v1239_v50 = vrot.slane %v1944_v47, %v1238_v49 }
 0x352   :  { %1093 = vmatpush1.bf16.msra.mxu1 %v1075_v44  ;;  %v1242_v44 = vsub.s32 4, %v2857_v9 }
 0x355   :  { %1941 = vmatmul.mubr.msk.bf16.vlgmr.msra.gmra.mrb[8].mxu1 %vm1086_vm10, %v2058_v22 }
 0x356   :  { %1165 = vmatprep.mubr.bf16.mxu1 %v2183_v31 }
 0x35e   :  { %v971_v60 = vpop.f32.mrb[0].mxu1 }
 0x35f   :  { %v973_v48 = vpop.f32.mrb[1].mxu1  ;;  %v1045_v17 = vmax.f32 %v971_v60, 0.0 }
 0x360   :  { %v975_v36 = vpop.f32.mrb[2].mxu1  ;;  %v1046_v46 = vmax.f32 %v973_v48, 0.0 }
 0x361   :  { %v1051_v10 = vmax.f32 %v975_v36, 0.0  ;;  %v977_v37 = vpop.f32.mrb[3].mxu1 }
 0x362   :  { %v1052_v35 = vmax.f32 %v977_v37, 0.0  ;;  %v1024_v41 = vpop.f32.mrb[8].mxu0 }
 0x363   :  { %v1071_v21 = vpack.c.bf16 %v1051_v10, %v1045_v17  ;;  %v1047_v24 = vmax.f32 %v1024_v41, 0.0  ;;  %v1026_v45 = vpop.f32.mrb[9].mxu0  ;;  %v1243_v17 = vrot.slane %v1944_v47, %v1242_v44 }
 0x364   :  { %v1072_v52 = vpack.c.bf16 %v1052_v35, %v1046_v46  ;;  %v1048_v54 = vmax.f32 %v1026_v45, 0.0  ;;  %v1028_v29 = vpop.f32.mrb[10].mxu0 }
 0x365   :  { %v1053_v2 = vmax.f32 %v1028_v29, 0.0  ;;  %v1030_v6 = vpop.f32.mrb[11].mxu0 }
 0x366   :  { %v1054_v56 = vmax.f32 %v1030_v6, 0.0  ;;  %v981_v18 = vpop.f32.mrb[4].mxu1  ;;  %1133 = vmatprep.subr.bf16.mxu1 %v1072_v52 }
 0x367   :  { %v1073_v33 = vpack.c.bf16 %v1053_v2, %v1047_v24  ;;  %v983_v11 = vpop.f32.mrb[5].mxu1  ;;  %1134 = vmatpush1.bf16.msra.mxu1 %v1071_v21  ;;  %v1057_v61 = vmax.f32 %v981_v18, 0.0 }
 0x368   :  { %v1074_v42 = vpack.c.bf16 %v1054_v56, %v1048_v54  ;;  %v985_v26 = vpop.f32.mrb[6].mxu1  ;;  %v1058_v51 = vmax.f32 %v983_v11, 0.0  ;;  %v2059_v11 = vld [vmem:[#allocation2] sm:$0xff] }
 0x369   :  { %v1063_v28 = vmax.f32 %v985_v26, 0.0  ;;  %v987_v53 = vpop.f32.mrb[7].mxu1 }
 0x36a   :  { %v1064_v55 = vmax.f32 %v987_v53, 0.0  ;;  %v1034_v23 = vpop.f32.mrb[12].mxu0  ;;  %1176 = vmatprep.subr.bf16.mxu0 %v1074_v42 }
 0x36b   :  { %v1077_v39 = vpack.c.bf16 %v1063_v28, %v1057_v61  ;;  %v1059_v57 = vmax.f32 %v1034_v23, 0.0  ;;  %v1036_v14 = vpop.f32.mrb[13].mxu0  ;;  %1177 = vmatpush1.bf16.msra.mxu0 %v1073_v33  ;;  %v2060_v61 = vld [vmem:[#allocation2 + $0x8] sm:$0xff] }
 0x36c   :  { %v1078_v38 = vpack.c.bf16 %v1064_v55, %v1058_v51  ;;  %v1060_v62 = vmax.f32 %v1036_v14, 0.0  ;;  %v1038_v32 = vpop.f32.mrb[14].mxu0 }
 0x36d   :  { %v1065_v34 = vmax.f32 %v1038_v32, 0.0  ;;  %v1040_v59 = vpop.f32.mrb[15].mxu0 }
 0x36e   :  { %v1066_v43 = vmax.f32 %v1040_v59, 0.0  ;;  %1135 = vmatprep.subr.bf16.mxu1 %v1078_v38 }
 0x36f   :  { %v1079_v40 = vpack.c.bf16 %v1065_v34, %v1059_v57  ;;  %1136 = vmatpush1.bf16.msra.mxu1 %v1077_v39  ;;  %v2061_v57 = vld [vmem:[#allocation2 + $0x10] sm:$0xff] }
 0x370   :  { %v1080_v3 = vpack.c.bf16 %v1066_v43, %v1060_v62  ;;  %v2062_v62 = vld [vmem:[#allocation2 + $0x18] sm:$0xff] }
 0x372   :  { %1942 = vmatmul.mubr.msk.bf16.vlgmr.msra.gmra.mrb[12].mxu1 %vm1086_vm10, %v2058_v22  ;;  %1178 = vmatprep.subr.bf16.mxu0 %v1080_v3 }
 0x373   :  { %1179 = vmatpush1.bf16.msra.mxu0 %v1079_v40 }
 0x376   :  { %1943 = vmatmul.mubr.msk.bf16.vlgmr.msra.gmra.mrb[16].mxu0 %vm1086_vm10, %v2058_v22  ;;  %v1246_v22 = vsub.s32 5, %v2857_v9 }
 0x378   :  { %v1247_v46 = vrot.slane %v1944_v47, %v1246_v22 }
 0x428   :  { %v1124_v15 = vpop.f32.mrb[8].mxu1 }
 0x429   :  { %v1254_v16 = vmul.f32 %v1227_v13, %v1124_v15  ;;  %v1126_v63 = vpop.f32.mrb[9].mxu1 }
 0x42a   :  { %v1255_v58 = vmul.f32 %v1231_v7, %v1126_v63  ;;  %v1128_v8 = vpop.f32.mrb[10].mxu1 }
 0x42b   :  { %1278 = vrot.lane.b32.xlu1 %v1254_v16, %s2185_s3  ;;  %v2867_v30 = vmul.f32 %v1227_v13, %v1128_v8  ;;  %v1130_v19 = vpop.f32.mrb[11].mxu1  ;;  %v2065_v16 = vld [vmem:[#allocation2 + $0x28] sm:$0xff] }
 0x42c   :  { %1280 = vrot.lane.b32.xlu0 %v1255_v58, %s2185_s3  ;;  %v2870_v20 = vmul.f32 %v1231_v7, %v1130_v19  ;;  %v2064_v7 = vld [vmem:[#allocation2 + $0x30] sm:$0xff] }
 0x445   :  { %v1167_v60 = vpop.f32.mrb[12].mxu1 }
 0x446   :  { %v1256_v48 = vmul.f32 %v1235_v25, %v1167_v60  ;;  %v1169_v36 = vpop.f32.mrb[13].mxu1 }
 0x447   :  { %v1257_v10 = vmul.f32 %v1239_v50, %v1169_v36  ;;  %v1171_v37 = vpop.f32.mrb[14].mxu1 }
 0x448   :  { %v2884_v35 = vmul.f32 %v1235_v25, %v1171_v37  ;;  %1282 = vrot.lane.b32.xlu1 %v1256_v48, %s2185_s3  ;;  %v1173_v41 = vpop.f32.mrb[15].mxu1 }
 0x449   :  { %v2887_v21 = vmul.f32 %v1239_v50, %v1173_v41  ;;  %1284 = vrot.lane.b32.xlu0 %v1257_v10, %s2185_s3  ;;  %v1210_v24 = vpop.f32.mrb[16].mxu0 }
 0x44a   :  { %v1258_v45 = vmul.f32 %v1243_v17, %v1210_v24  ;;  %v1212_v52 = vpop.f32.mrb[17].mxu0 }
 0x44b   :  { %v1259_v54 = vmul.f32 %v1247_v46, %v1212_v52  ;;  %v1214_v29 = vpop.f32.mrb[18].mxu0 }
 0x44c   :  { %1286 = vrot.lane.b32.xlu1 %v1258_v45, %s2185_s3  ;;  %v2891_v2 = vmul.f32 %v1243_v17, %v1214_v29  ;;  %v1216_v6 = vpop.f32.mrb[19].mxu0  ;;  %v2942_v29 = vand.u32 127, %v1224_v4 }
 0x44d   :  { %1288 = vrot.lane.b32.xlu0 %v1259_v54, %s2185_s3  ;;  %v2894_v56 = vmul.f32 %v1247_v46, %v1216_v6 }
 0x44e   :  { %vm1426_vm13 = vcmp.lt.s32.totalorder %v2942_v29, 1  ;;  %vm1488_vm14 = vcmp.lt.s32.totalorder %v2942_v29, 127  ;;  %vm1590_vm15 = vcmp.lt.s32.totalorder %v2942_v29, 18  ;;  %vm1652_vm0 = vcmp.lt.s32.totalorder %v2942_v29, 110 }
 0x49d   :  { %v1279_v18 = vpop.permute.xlu1 %1278 }
 0x49e   :  { %v1281_v33 = vpop.permute.xlu0 %1280  ;;  %v2896_v42 = vadd.f32 %v2059_v11, %v1279_v18 }
 0x49f   :  { %v1303_v26 = vsel %vm1302_vm12, %v1279_v18, %v1281_v33 }
 0x4a0   :  { %v2899_v28 = vadd.f32 %v2060_v61, %v1303_v26  ;;  %v1378_v53 = vrot.slane %v2896_v42, 3 }
 0x4a2   :  { %v1379_v51 = vrot.slane %v2899_v28, 3  ;;  %1385 = vrot.lane.b32.xlu1 %v1378_v53, %s2182_s8 }
 0x4a4   :  { %1387 = vrot.lane.b32.xlu0 %v1379_v51, %s2182_s8 }
 0x4ba   :  { %v1283_v55 = vpop.permute.xlu1 %1282 }
 0x4bb   :  { %v1304_v23 = vsel %vm1302_vm12, %v1281_v33, %v1283_v55  ;;  %v1285_v39 = vpop.permute.xlu0 %1284 }
 0x4bc   :  { %v2906_v14 = vadd.f32 %v2061_v57, %v1304_v23  ;;  %v1305_v38 = vsel %vm1302_vm12, %v1283_v55, %v1285_v39 }
 0x4bd   :  { %v2909_v32 = vadd.f32 %v2062_v62, %v1305_v38 }
 0x4be   :  { %v1380_v34 = vrot.slane %v2906_v14, 3  ;;  %v1287_v59 = vpop.permute.xlu1 %1286 }
 0x4bf   :  { %v1381_v43 = vrot.slane %v2909_v32, 3  ;;  %v1306_v40 = vsel %vm1302_vm12, %v1285_v39, %v1287_v59  ;;  %v1289_v3 = vpop.permute.xlu0 %1288 }
 0x4c0   :  { %v2914_v47 = vadd.f32 %v2063_v27, %v1306_v40  ;;  %v1307_v13 = vsel %vm1302_vm12, %v1287_v59, %v1289_v3  ;;  %v2917_v15 = vadd.f32 %v2064_v7, %v1289_v3  ;;  %1389 = vrot.lane.b32.xlu1 %v1380_v34, %s2182_s8 }
 0x4c1   :  { %v2920_v63 = vadd.f32 %v2065_v16, %v1307_v13  ;;  %1391 = vrot.lane.b32.xlu0 %v1381_v43, %s2182_s8 }
 0x4c2   :  { %v1382_v58 = vrot.slane %v2914_v47, 3  ;;  %v1384_v19 = vrot.slane %v2917_v15, 3 }
 0x4c3   :  { %v1383_v8 = vrot.slane %v2920_v63, 3 }
 0x4c4   :  { %1393 = vrot.lane.b32.xlu1 %v1382_v58, %s2182_s8 }
 0x4c5   :  { %1395 = vrot.lane.b32.xlu0 %v1383_v8, %s2182_s8 }
 0x4c8   :  { %1397 = vrot.lane.b32.xlu1 %v1384_v19, %s2182_s8 }
 0x514   :  { %v1386_v25 = vpop.permute.xlu1 %1385 }
 0x516   :  { %v1388_v50 = vpop.permute.xlu0 %1387 }
 0x517   :  { %v1400_v60 = vsel %vm840_vm8, %v1386_v25, %v1388_v50 }
 0x518   :  { %1412 = vrot.lane.b32.xlu0 %v1400_v60, %s2186_s1 }
 0x51c   :  { %1476 = vrot.lane.b32.xlu0 %v1400_v60, %s2179_s5 }
 0x532   :  { %v1390_v48 = vpop.permute.xlu1 %1389 }
 0x533   :  { %v1401_v36 = vsel %vm840_vm8, %v1388_v50, %v1390_v48  ;;  %v1392_v17 = vpop.permute.xlu0 %1391 }
 0x534   :  { %v1402_v10 = vsel %vm840_vm8, %v1390_v48, %v1392_v17  ;;  %1414 = vrot.lane.b32.xlu1 %v1401_v36, %s2186_s1 }
 0x535   :  { %1416 = vrot.lane.b32.xlu0 %v1402_v10, %s2186_s1 }
 0x536   :  { %v1394_v37 = vpop.permute.xlu1 %1393 }
 0x537   :  { %v1396_v46 = vpop.permute.xlu0 %1395  ;;  %v1403_v41 = vsel %vm840_vm8, %v1392_v17, %v1394_v37 }
 0x538   :  { %1478 = vrot.lane.b32.xlu1 %v1401_v36, %s2179_s5  ;;  %v1404_v24 = vsel %vm840_vm8, %v1394_v37, %v1396_v46 }
 0x539   :  { %1480 = vrot.lane.b32.xlu0 %v1402_v10, %s2179_s5 }
 0x53a   :  { %v1398_v45 = vpop.permute.xlu1 %1397 }
 0x53b   :  { %v1405_v52 = vsel %vm840_vm8, %v1396_v46, %v1398_v45 }
 0x53c   :  { %1418 = vrot.lane.b32.xlu1 %v1403_v41, %s2186_s1 }
 0x53d   :  { %1420 = vrot.lane.b32.xlu0 %v1404_v24, %s2186_s1 }
 0x540   :  { %1482 = vrot.lane.b32.xlu1 %v1403_v41, %s2179_s5 }
 0x541   :  { %1484 = vrot.lane.b32.xlu0 %v1404_v24, %s2179_s5 }
 0x544   :  { %1422 = vrot.lane.b32.xlu1 %v1405_v52, %s2186_s1 }
 0x548   :  { %1486 = vrot.lane.b32.xlu1 %v1405_v52, %s2179_s5 }
 0x58a   :  { %v1413_v54 = vpop.permute.xlu0 %1412 }
 0x58e   :  { %v1477_v6 = vpop.permute.xlu0 %1476 }
 0x5a6   :  { %v1415_v18 = vpop.permute.xlu1 %1414 }
 0x5a7   :  { %v1431_v33 = vsel %vm1426_vm13, %v1413_v54, %v1415_v18  ;;  %v1417_v11 = vpop.permute.xlu0 %1416 }
 0x5a8   :  { %v1440_v26 = vrot.slane %v1431_v33, 5  ;;  %v1430_v23 = vsel %vm1426_vm13, %v1415_v18, %v1417_v11 }
 0x5a9   :  { %v1441_v62 = vrot.slane %v1430_v23, 5 }
 0x5aa   :  { %1447 = vrot.lane.b32.xlu1 %v1440_v26, %s2185_s3  ;;  %v1479_v61 = vpop.permute.xlu1 %1478 }
 0x5ab   :  { %v1493_v53 = vsel %vm1488_vm14, %v1477_v6, %v1479_v61  ;;  %v1481_v51 = vpop.permute.xlu0 %1480 }
 0x5ac   :  { %v1501_v4 = vrot.slane %v1493_v53, 5  ;;  %v1492_v55 = vsel %vm1488_vm14, %v1479_v61, %v1481_v51 }
 0x5ad   :  { %v1502_v39 = vrot.slane %v1492_v55, 5 }
 0x5ae   :  { %1507 = vrot.lane.b32.xlu0 %v1501_v4, %s2185_s3  ;;  %v1419_v57 = vpop.permute.xlu1 %1418 }
 0x5af   :  { %v1429_v38 = vsel %vm1426_vm13, %v1417_v11, %v1419_v57  ;;  %1509 = vrot.lane.b32.xlu1 %v1502_v39, %s2185_s3  ;;  %v1421_v59 = vpop.permute.xlu0 %1420 }
 0x5b0   :  { %v1442_v34 = vrot.slane %v1429_v38, 5  ;;  %v1428_v19 = vsel %vm1426_vm13, %v1419_v57, %v1421_v59 }
 0x5b1   :  { %v1443_v60 = vrot.slane %v1428_v19, 5 }
 0x5b2   :  { %1449 = vrot.lane.b32.xlu0 %v1441_v62, %s2185_s3  ;;  %v1483_v43 = vpop.permute.xlu1 %1482 }
 0x5b3   :  { %v1491_v40 = vsel %vm1488_vm14, %v1481_v51, %v1483_v43  ;;  %1451 = vrot.lane.b32.xlu1 %v1442_v34, %s2185_s3  ;;  %v1485_v27 = vpop.permute.xlu0 %1484 }
 0x5b4   :  { %v1503_v3 = vrot.slane %v1491_v40, 5  ;;  %v1490_v25 = vsel %vm1488_vm14, %v1483_v43, %v1485_v27 }
 0x5b5   :  { %v1504_v48 = vrot.slane %v1490_v25, 5 }
 0x5b6   :  { %1511 = vrot.lane.b32.xlu0 %v1503_v3, %s2185_s3  ;;  %v1423_v13 = vpop.permute.xlu1 %1422 }
 0x5b7   :  { %v1427_v7 = vsel %vm1426_vm13, %v1421_v59, %v1423_v13  ;;  %v1432_v16 = vsel %vm1426_vm13, %v1423_v13, %v1413_v54 }
 0x5b8   :  { %v1439_v58 = vrot.slane %v1432_v16, 5  ;;  %v1444_v8 = vrot.slane %v1427_v7, 5 }
 0x5ba   :  { %1445 = vrot.lane.b32.xlu0 %v1439_v58, %s2185_s3  ;;  %1455 = vrot.lane.b32.xlu1 %v1444_v8, %s2185_s3  ;;  %v1487_v50 = vpop.permute.xlu1 %1486 }
 0x5bb   :  { %v1489_v36 = vsel %vm1488_vm14, %v1485_v27, %v1487_v50  ;;  %v1494_v17 = vsel %vm1488_vm14, %v1487_v50, %v1477_v6 }
 0x5bc   :  { %v1505_v10 = vrot.slane %v1489_v36, 5  ;;  %v1506_v37 = vrot.slane %v1494_v17, 5 }
 0x5be   :  { %1453 = vrot.lane.b32.xlu0 %v1443_v60, %s2185_s3  ;;  %1513 = vrot.lane.b32.xlu1 %v1504_v48, %s2185_s3 }
 0x5c2   :  { %1517 = vrot.lane.b32.xlu1 %v1506_v37, %s2185_s3  ;;  %1515 = vrot.lane.b32.xlu0 %v1505_v10, %s2185_s3 }
 0x61c   :  { %v1448_v46 = vpop.permute.xlu1 %1447 }
 0x620   :  { %v1508_v41 = vpop.permute.xlu0 %1507 }
 0x621   :  { %v1510_v24 = vpop.permute.xlu1 %1509 }
 0x622   :  { %v1519_v3 = vsel %vm1302_vm12, %v1508_v41, %v1510_v24 }
 0x624   :  { %v1450_v45 = vpop.permute.xlu0 %1449 }
 0x625   :  { %v1458_v52 = vsel %vm1302_vm12, %v1448_v46, %v1450_v45  ;;  %v1452_v18 = vpop.permute.xlu1 %1451 }
 0x626   :  { %v1471_v54 = vmax.f32 %v2906_v14, %v1458_v52  ;;  %v1459_v51 = vsel %vm1302_vm12, %v1450_v45, %v1452_v18 }
 0x627   :  { %v1472_v39 = vmax.f32 %v2909_v32, %v1459_v51 }
 0x628   :  { %v1512_v6 = vpop.permute.xlu0 %1511 }
 0x629   :  { %v1520_v33 = vsel %vm1302_vm12, %v1510_v24, %v1512_v6 }
 0x62a   :  { %v2985_v11 = vmax.f32 %v1471_v54, %v1520_v33 }
 0x62c   :  { %v1547_v26 = vrot.slane %v2985_v11, 3  ;;  %v1446_v61 = vpop.permute.xlu0 %1445  ;;  %v1456_v53 = vpop.permute.xlu1 %1455 }
 0x62d   :  { %v1457_v4 = vsel %vm1302_vm12, %v1446_v61, %v1448_v46  ;;  %v1469_v55 = vmax.f32 %v2896_v42, %v1446_v61  ;;  %v1475_v50 = vmax.f32 %v2917_v15, %v1456_v53 }
 0x62e   :  { %1556 = vrot.lane.b32.xlu0 %v1547_v26, %s2182_s8  ;;  %v1470_v57 = vmax.f32 %v2899_v28, %v1457_v4 }
 0x62f   :  { %v2992_v23 = vmax.f32 %v1469_v55, %v1508_v41 }
 0x630   :  { %v1454_v38 = vpop.permute.xlu0 %1453  ;;  %v1514_v62 = vpop.permute.xlu1 %1513  ;;  %v3004_v13 = vmax.f32 %v1470_v57, %v1519_v3 }
 0x631   :  { %v1545_v34 = vrot.slane %v2992_v23, 3  ;;  %v1460_v59 = vsel %vm1302_vm12, %v1452_v18, %v1454_v38  ;;  %v1521_v43 = vsel %vm1302_vm12, %v1512_v6, %v1514_v62  ;;  %v1461_v27 = vsel %vm1302_vm12, %v1454_v38, %v1456_v53 }
 0x632   :  { %v2999_v40 = vmax.f32 %v1472_v39, %v1521_v43  ;;  %v1473_v7 = vmax.f32 %v2914_v47, %v1460_v59  ;;  %v1474_v60 = vmax.f32 %v2920_v63, %v1461_v27  ;;  %v1546_v36 = vrot.slane %v3004_v13, 3 }
 0x633   :  { %1552 = vrot.lane.b32.xlu0 %v1545_v34, %s2182_s8 }
 0x634   :  { %v1548_v16 = vrot.slane %v2999_v40, 3  ;;  %v1516_v58 = vpop.permute.xlu0 %1515  ;;  %v1518_v8 = vpop.permute.xlu1 %1517 }
 0x635   :  { %v1522_v19 = vsel %vm1302_vm12, %v1514_v62, %v1516_v58  ;;  %v1523_v25 = vsel %vm1302_vm12, %v1516_v58, %v1518_v8  ;;  %v3019_v37 = vmax.f32 %v1475_v50, %v1518_v8 }
 0x636   :  { %v3012_v48 = vmax.f32 %v1473_v7, %v1522_v19  ;;  %1558 = vrot.lane.b32.xlu1 %v1548_v16, %s2182_s8  ;;  %v3017_v10 = vmax.f32 %v1474_v60, %v1523_v25 }
 0x637   :  { %v1551_v41 = vrot.slane %v3019_v37, 3 }
 0x638   :  { %v1549_v17 = vrot.slane %v3012_v48, 3  ;;  %v1550_v46 = vrot.slane %v3017_v10, 3 }
 0x63a   :  { %1560 = vrot.lane.b32.xlu0 %v1549_v17, %s2182_s8  ;;  %1554 = vrot.lane.b32.xlu1 %v1546_v36, %s2182_s8 }
 0x63e   :  { %1564 = vrot.lane.b32.xlu0 %v1551_v41, %s2182_s8  ;;  %1562 = vrot.lane.b32.xlu1 %v1550_v46, %s2182_s8 }
 0x6a0   :  { %v1557_v24 = vpop.permute.xlu0 %1556 }
 0x6a5   :  { %v1553_v45 = vpop.permute.xlu0 %1552 }
 0x6a8   :  { %v1559_v52 = vpop.permute.xlu1 %1558 }
 0x6a9   :  { %v1568_v54 = vsel %vm840_vm8, %v1557_v24, %v1559_v52 }
 0x6aa   :  { %1582 = vrot.lane.b32.xlu1 %v1568_v54, %s2187_s11 }
 0x6ac   :  { %v1561_v18 = vpop.permute.xlu0 %1560  ;;  %v1555_v6 = vpop.permute.xlu1 %1554 }
 0x6ad   :  { %v1567_v33 = vsel %vm840_vm8, %v1555_v6, %v1557_v24  ;;  %v1569_v26 = vsel %vm840_vm8, %v1559_v52, %v1561_v18  ;;  %v1566_v61 = vsel %vm840_vm8, %v1553_v45, %v1555_v6 }
 0x6ae   :  { %1644 = vrot.lane.b32.xlu1 %v1568_v54, %s2175_s2  ;;  %1580 = vrot.lane.b32.xlu0 %v1567_v33, %s2187_s11 }
 0x6b0   :  { %v1565_v53 = vpop.permute.xlu0 %1564  ;;  %v1563_v51 = vpop.permute.xlu1 %1562 }
 0x6b1   :  { %v1570_v4 = vsel %vm840_vm8, %v1561_v18, %v1563_v51  ;;  %v1571_v55 = vsel %vm840_vm8, %v1563_v51, %v1565_v53 }
 0x6b2   :  { %1584 = vrot.lane.b32.xlu0 %v1569_v26, %s2187_s11  ;;  %1578 = vrot.lane.b32.xlu1 %v1566_v61, %s2187_s11 }
 0x6b6   :  { %1588 = vrot.lane.b32.xlu0 %v1571_v55, %s2187_s11  ;;  %1586 = vrot.lane.b32.xlu1 %v1570_v4, %s2187_s11 }
 0x6ba   :  { %1642 = vrot.lane.b32.xlu0 %v1567_v33, %s2175_s2  ;;  %1640 = vrot.lane.b32.xlu1 %v1566_v61, %s2175_s2 }
 0x6be   :  { %1646 = vrot.lane.b32.xlu0 %v1569_v26, %s2175_s2  ;;  %1648 = vrot.lane.b32.xlu1 %v1570_v4, %s2175_s2  ;;  %v1342_v4 = vld [vmem:[#allocation2 + $0x3] ss:$8 sm:$0xf] }
 0x6c2   :  { %1650 = vrot.lane.b32.xlu0 %v1571_v55, %s2175_s2  ;;  %v1343_v55 = vld [vmem:[#allocation2 + $0x3] ss:$8 sm:$0x70] }
 0x71c   :  { %v1583_v39 = vpop.permute.xlu1 %1582 }
 0x720   :  { %v1581_v57 = vpop.permute.xlu0 %1580  ;;  %v1645_v38 = vpop.permute.xlu1 %1644 }
 0x721   :  { %v1594_v19 = vsel %vm1590_vm15, %v1581_v57, %v1583_v39 }
 0x722   :  { %v1605_v36 = vrot.slane %v1594_v19, 5 }
 0x724   :  { %v1585_v62 = vpop.permute.xlu0 %1584  ;;  %v1579_v34 = vpop.permute.xlu1 %1578 }
 0x725   :  { %v1595_v59 = vsel %vm1590_vm15, %v1579_v34, %v1581_v57  ;;  %v1593_v3 = vsel %vm1590_vm15, %v1583_v39, %v1585_v62 }
 0x726   :  { %v1604_v43 = vrot.slane %v1595_v59, 5  ;;  %v1606_v58 = vrot.slane %v1593_v3, 5 }
 0x728   :  { %v1589_v27 = vpop.permute.xlu0 %1588  ;;  %1611 = vrot.lane.b32.xlu0 %v1604_v43, %s2185_s3  ;;  %v1587_v7 = vpop.permute.xlu1 %1586 }
 0x729   :  { %v1596_v16 = vsel %vm1590_vm15, %v1589_v27, %v1579_v34  ;;  %v1591_v25 = vsel %vm1590_vm15, %v1587_v7, %v1589_v27  ;;  %v1592_v46 = vsel %vm1590_vm15, %v1585_v62, %v1587_v7  ;;  %v3076_v34 = vor.u32 %v1343_v55, %v1342_v4 }
 0x72a   :  { %v1603_v8 = vrot.slane %v1596_v16, 5  ;;  %v1608_v17 = vrot.slane %v1591_v25, 5  ;;  %v1607_v52 = vrot.slane %v1592_v46, 5 }
 0x72c   :  { %v1643_v50 = vpop.permute.xlu0 %1642  ;;  %1609 = vrot.lane.b32.xlu1 %v1603_v8, %s2185_s3  ;;  %1615 = vrot.lane.b32.xlu0 %v1606_v58, %s2185_s3  ;;  %v1641_v60 = vpop.permute.xlu1 %1640 }
 0x72d   :  { %v1656_v41 = vsel %vm1652_vm0, %v1643_v50, %v1645_v38  ;;  %v1657_v18 = vsel %vm1652_vm0, %v1641_v60, %v1643_v50 }
 0x72e   :  { %v1666_v54 = vrot.slane %v1656_v41, 5  ;;  %v1665_v26 = vrot.slane %v1657_v18, 5 }
 0x730   :  { %v1647_v24 = vpop.permute.xlu0 %1646  ;;  %1613 = vrot.lane.b32.xlu1 %v1605_v36, %s2185_s3  ;;  %1619 = vrot.lane.b32.xlu0 %v1608_v17, %s2185_s3  ;;  %v1649_v45 = vpop.permute.xlu1 %1648 }
 0x731   :  { %v1654_v6 = vsel %vm1652_vm0, %v1647_v24, %v1649_v45  ;;  %v1655_v53 = vsel %vm1652_vm0, %v1645_v38, %v1647_v24  ;;  %v2188_v24 = vmov 1966171168  }
 0x732   :  { %v1668_v61 = vrot.slane %v1654_v6, 5  ;;  %v1667_v39 = vrot.slane %v1655_v53, 5 }
 0x734   :  { %v1651_v33 = vpop.permute.xlu0 %1650  ;;  %1617 = vrot.lane.b32.xlu1 %v1607_v52, %s2185_s3  ;;  %1673 = vrot.lane.b32.xlu0 %v1666_v54, %s2185_s3 }
 0x735   :  { %v1658_v51 = vsel %vm1652_vm0, %v1651_v33, %v1641_v60  ;;  %v1653_v62 = vsel %vm1652_vm0, %v1649_v45, %v1651_v33  ;;  %v1721_v45 = vunpack.c.l.s4 %v2188_v24 }
 0x736   :  { %v1670_v57 = vrot.slane %v1658_v51, 5  ;;  %v1669_v38 = vrot.slane %v1653_v62, 5 }
 0x737   :  { %v1722_v4 = vunpack.c.0.s8 %v1721_v45 }
 0x738   :  { %1671 = vrot.lane.b32.xlu1 %v1665_v26, %s2185_s3  ;;  %1677 = vrot.lane.b32.xlu0 %v1668_v61, %s2185_s3 }
 0x73c   :  { %1675 = vrot.lane.b32.xlu1 %v1667_v39, %s2185_s3  ;;  %1681 = vrot.lane.b32.xlu0 %v1670_v57, %s2185_s3 }
 0x740   :  { %1679 = vrot.lane.b32.xlu1 %v1669_v38, %s2185_s3  ;;  %1352 = vrot.lane.b32.xlu0 %v3076_v34, %s2177_s29 }
 0x744   :  { %1346 = vrot.lane.b32.xlu1 %v3076_v34, %s2179_s5 }
 0x79a   :  { %v1612_v59 = vpop.permute.xlu0 %1611 }
 0x79e   :  { %v1616_v43 = vpop.permute.xlu0 %1615  ;;  %v1610_v3 = vpop.permute.xlu1 %1609 }
 0x79f   :  { %v1621_v58 = vsel %vm1302_vm12, %v1610_v3, %v1612_v59  ;;  %v1633_v8 = vmax.f32 %v2992_v23, %v1610_v3 }
 0x7a0   :  { %v1634_v19 = vmax.f32 %v3004_v13, %v1621_v58 }
 0x7a2   :  { %v1620_v29 = vpop.permute.xlu0 %1619  ;;  %v1614_v27 = vpop.permute.xlu1 %1613 }
 0x7a3   :  { %v1622_v60 = vsel %vm1302_vm12, %v1612_v59, %v1614_v27  ;;  %v1623_v36 = vsel %vm1302_vm12, %v1614_v27, %v1616_v43  ;;  %v1639_v52 = vmax.f32 %v3019_v37, %v1620_v29  ;;  %v1725_v27 = vsub.s32 %v1722_v4, %v2857_v9 }
 0x7a4   :  { %v1635_v54 = vmax.f32 %v2985_v11, %v1622_v60  ;;  %v1636_v23 = vmax.f32 %v2999_v40, %v1623_v36 }
 0x7a6   :  { %v1674_v7 = vpop.permute.xlu0 %1673  ;;  %v1618_v16 = vpop.permute.xlu1 %1617 }
 0x7a7   :  { %v1624_v13 = vsel %vm1302_vm12, %v1616_v43, %v1618_v16  ;;  %v1625_v61 = vsel %vm1302_vm12, %v1618_v16, %v1620_v29 }
 0x7a8   :  { %v1637_v37 = vmax.f32 %v3012_v48, %v1624_v13  ;;  %v1638_v57 = vmax.f32 %v3017_v10, %v1625_v61 }
 0x7aa   :  { %v1678_v25 = vpop.permute.xlu0 %1677  ;;  %v1672_v50 = vpop.permute.xlu1 %1671 }
 0x7ab   :  { %v1683_v17 = vsel %vm1302_vm12, %v1672_v50, %v1674_v7  ;;  %v1695_v46 = vmax.f32 %v1633_v8, %v1672_v50 }
 0x7ac   :  { %v1696_v41 = vmax.f32 %v1634_v19, %v1683_v17 }
 0x7ad   :  { %vm1703_vm3 = vcmp.gt.f32.partialorder %v1695_v46, 0.1 }
 0x7ae   :  { %v1682_v18 = vpop.permute.xlu0 %1681  ;;  %v1676_v6 = vpop.permute.xlu1 %1675  ;;  %vm1704_vm6 = vcmp.gt.f32.partialorder %v1696_v41, 0.1  ;;  %v1710_v40 = vsel %vm1703_vm3, 1, %v2183_v31 }
 0x7af   :  { %v1684_v33 = vsel %vm1302_vm12, %v1674_v7, %v1676_v6  ;;  %v1685_v26 = vsel %vm1302_vm12, %v1676_v6, %v1678_v25  ;;  %v1701_v11 = vmax.f32 %v1639_v52, %v1682_v18  ;;  %v1711_v55 = vsel %vm1704_vm6, 1, %v2183_v31 }
 0x7b0   :  { %v1697_v53 = vmax.f32 %v1635_v54, %v1684_v33  ;;  %v1698_v51 = vmax.f32 %v1636_v23, %v1685_v26  ;;  %v1717_v7 = vcombine.low %v1710_v40, %v1711_v55 }
 0x7b1   :  { %vm1709_vm10 = vcmp.gt.f32.partialorder %v1701_v11, 0.1 }
 0x7b2   :  { %vm1705_vm7 = vcmp.gt.f32.partialorder %v1697_v53, 0.1  ;;  %vm1706_vm9 = vcmp.gt.f32.partialorder %v1698_v51, 0.1  ;;  %v1680_v39 = vpop.permute.xlu1 %1679  ;;  %v1353_v43 = vpop.permute.xlu0 %1352  ;;  %v1726_v36 = vrot.slane %v1717_v7, %v1725_v27 }
 0x7b3   :  { %v1712_v62 = vsel %vm1705_vm7, 1, %v2183_v31  ;;  %v1713_v38 = vsel %vm1706_vm9, 1, %v2183_v31  ;;  %v1686_v59 = vsel %vm1302_vm12, %v1678_v25, %v1680_v39  ;;  %v1687_v48 = vsel %vm1302_vm12, %v1680_v39, %v1682_v18 }
 0x7b4   :  { %v1718_v3 = vcombine.low %v1712_v62, %v1713_v38  ;;  %v1699_v29 = vmax.f32 %v1637_v37, %v1686_v59  ;;  %v1700_v16 = vmax.f32 %v1638_v57, %v1687_v48  ;;  %v1354_v8 = vrot.slane %v1353_v43, 1 }
 0x7b5   :  { %v1716_v25 = vsel %vm1709_vm10, 1, %v2183_v31 }
 0x7b6   :  { %vm1707_vm11 = vcmp.gt.f32.partialorder %v1699_v29, 0.1  ;;  %v1347_v58 = vpop.permute.xlu1 %1346  ;;  %v1733_v10 = vrot.slane %v1718_v3, %v1725_v27  ;;  %vm1708_vm13 = vcmp.gt.f32.partialorder %v1700_v16, 0.1  ;;  %v1747_v24 = vrot.slane %v1716_v25, %v1725_v27  ;;  %v2066_v3 = vld [vmem:[#allocation2 + $0x38] sm:$0xff] }
 0x7b7   :  { %v1714_v19 = vsel %vm1707_vm11, 1, %v2183_v31  ;;  %v1348_v50 = vrot.slane %v1347_v58, 1  ;;  %v1715_v60 = vsel %vm1708_vm13, 1, %v2183_v31  ;;  %v1355_v54 = vsel %vm452_vm4, %v1353_v43, %v1354_v8 }
 0x7b8   :  { %v1719_v17 = vcombine.low %v1714_v19, %v1715_v60  ;;  %v1748_v45 = vcombine.high %v1726_v36, %v1733_v10 }
 0x7b9   :  { %v1349_v46 = vsel %vm549_vm5, %v1347_v58, %v1348_v50 }
 0x7ba   :  { %v1351_v41 = vmax.f32 %v3076_v34, %v1349_v46  ;;  %v1740_v52 = vrot.slane %v1719_v17, %v1725_v27  ;;  %v1756_v18 = vrot.slane %v1748_v45, %v1725_v27 }
 0x7bc   :  { %v1357_v23 = vmax.f32 %v1351_v41, %v1355_v54  ;;  %v1749_v13 = vcombine.high %v1740_v52, %v1747_v24  ;;  %v2067_v52 = vld [vmem:[#allocation2 + $0x40] sm:$0xff] }
 0x7be   :  { %1365 = vrot.lane.b32.xlu0 %v1357_v23, %s2174_s27  ;;  %1359 = vrot.lane.b32.xlu1 %v1357_v23, %s2175_s2  ;;  %v1763_v6 = vrot.slane %v1749_v13, %v1725_v27 }
 0x7c0   :  { %v1764_v31 = vcombine.high %v1756_v18, %v1763_v6 }
 0x7c2   :  { %1290 = vrot.lane.b32.xlu0 %v2867_v30, %s2185_s3  ;;  %1765 = vrot.lane.b32.xlu1 %v1764_v31, %s2182_s8  ;;  %v2069_v31 = vld [vmem:[#allocation2 + $0x50] sm:$0xff] }
 0x7c6   :  { %1294 = vrot.lane.b32.xlu0 %v2884_v35, %s2185_s3  ;;  %1292 = vrot.lane.b32.xlu1 %v2870_v20, %s2185_s3 }
 0x7ca   :  { %1298 = vrot.lane.b32.xlu0 %v2891_v2, %s2185_s3  ;;  %1296 = vrot.lane.b32.xlu1 %v2887_v21, %s2185_s3 }
 0x7ce   :  { %1300 = vrot.lane.b32.xlu1 %v2894_v56, %s2185_s3 }
 0x830   :  { %v1366_v34 = vpop.permute.xlu0 %1365  ;;  %v1360_v33 = vpop.permute.xlu1 %1359 }
 0x831   :  { %v1367_v30 = vrot.slane %v1366_v34, 1  ;;  %v1361_v26 = vrot.slane %v1360_v33, 1 }
 0x833   :  { %v1362_v61 = vsel %vm211_vm2, %v1360_v33, %v1361_v26  ;;  %v1368_v35 = vsel %vm114_vm1, %v1366_v34, %v1367_v30 }
 0x834   :  { %v1364_v53 = vmax.f32 %v1357_v23, %v1362_v61  ;;  %v1766_v51 = vpop.permute.xlu1 %1765  ;;  %v2071_v61 = vld [vmem:[#allocation2 + $0x60] sm:$0xff] }
 0x835   :  { %v1767_v37 = vrot.slane %v1766_v51, 1 }
 0x836   :  { %v1370_v20 = vmax.f32 %v1364_v53, %v1368_v35  ;;  %v2072_v35 = vld [vmem:[#allocation2 + $0x68] sm:$0xff] }
 0x837   :  { %v1768_v2 = vsel %vm840_vm8, %v1766_v51, %v1767_v37 }
 0x838   :  { %vm1702_vm4 = vcmp.gt.f32.partialorder %v1370_v20, 0.1  ;;  %vm1769_vm5 = vcmp.ne.s32.totalorder %v1768_v2, 0 }
 0x839   :  { %vm1770_vm14 = vmand %vm1702_vm4, %vm1769_vm5 }
 0x83a   :  { %v1945_v21 = vsel %vm1770_vm14, 1.0, %v2184_v5 }
 0x83b   :  { %v1785_v56 = vrot.slane %v1945_v21, %v1234_v12  ;;  %v1789_v4 = vrot.slane %v1945_v21, %v1238_v49  ;;  %v1777_v11 = vrot.slane %v1945_v21, %v1226_v1  ;;  %v1781_v40 = vrot.slane %v1945_v21, %v1230_v0  ;;  %v1291_v49 = vpop.permute.xlu0 %1290  ;;  %v1293_v1 = vpop.permute.xlu1 %1292 }
 0x83c   :  { %v1793_v57 = vrot.slane %v1945_v21, %v1242_v44  ;;  %v1797_v5 = vrot.slane %v1945_v21, %v1246_v22  ;;  %v1334_v48 = vadd.f32 %v2066_v3, %v1291_v49 }
 0x83d   :  { %v2046_v55 = vpack.i.bf16 %v1789_v4, %v1785_v56  ;;  %v2041_v39 = vpack.i.bf16 %v1781_v40, %v1777_v11 }
 0x83e   :  { %v2051_v12 = vpack.i.bf16 %v1797_v5, %v1793_v57 }
 0x83f   :  { %2047 = vrot.lane.b32.xlu1 %v2046_v55, %s2185_s3  ;;  %2042 = vrot.lane.b32.xlu0 %v2041_v39, %s2185_s3  ;;  %v1295_v62 = vpop.permute.xlu0 %1294  ;;  %v1297_v38 = vpop.permute.xlu1 %1296 }
 0x840   :  { %v1310_v23 = vsel %vm1302_vm12, %v1295_v62, %v1297_v38 }
 0x841   :  { %v1337_v34 = vadd.f32 %v2069_v31, %v1310_v23 }
 0x843   :  { %2052 = vrot.lane.b32.xlu0 %v2051_v12, %s2185_s3  ;;  %v1299_v0 = vpop.permute.xlu0 %1298  ;;  %v1301_v59 = vpop.permute.xlu1 %1300 }
 0x844   :  { %v1311_v13 = vsel %vm1302_vm12, %v1297_v38, %v1299_v0  ;;  %v1312_v33 = vsel %vm1302_vm12, %v1299_v0, %v1301_v59  ;;  %v1340_v51 = vadd.f32 %v2072_v35, %v1301_v59 }
 0x845   :  { %v1339_v53 = vadd.f32 %v2071_v61, %v1312_v33 }
 0x8b1   :  { %v2043_v43 = vpop.permute.xlu0 %2042  ;;  %v2048_v9 = vpop.permute.xlu1 %2047 }
 0x8b2   :  { %v2045_v44 = vunpack.i.h.bf16 %v2043_v43  ;;  %v2044_v29 = vunpack.i.l.bf16 %v2043_v43  ;;  %v2049_v7 = vunpack.i.l.bf16 %v2048_v9  ;;  %v2050_v8 = vunpack.i.h.bf16 %v2048_v9 }
 0x8b4   :  { %v1822_v22 = vmul.f32 %v2044_v29, %v2896_v42  ;;  %v1829_v27 = vmul.f32 %v2044_v29, %v1334_v48  ;;  %v1810_v58 = vsel %vm1302_vm12, %v2044_v29, %v2045_v44  ;;  %v1811_v25 = vsel %vm1302_vm12, %v2045_v44, %v2049_v7 }
 0x8b5   :  { %v2053_v16 = vpop.permute.xlu0 %2052  ;;  %v1823_v50 = vmul.f32 %v1810_v58, %v2899_v28  ;;  %v1812_v42 = vsel %vm1302_vm12, %v2049_v7, %v2050_v8  ;;  %v1824_v36 = vmul.f32 %v1811_v25, %v2906_v14  ;;  %v1308_v28 = vsel %vm1302_vm12, %v1291_v49, %v1293_v1 }
 0x8b6   :  { %v2055_v10 = vunpack.i.h.bf16 %v2053_v16  ;;  %1864 = vrot.lane.b32.xlu0 %v1829_v27, %s2182_s8  ;;  %1850 = vrot.lane.b32.xlu1 %v1822_v22, %s2182_s8  ;;  %v2054_v60 = vunpack.i.l.bf16 %v2053_v16  ;;  %v1825_v17 = vmul.f32 %v1812_v42, %v2909_v32  ;;  %v1335_v14 = vadd.f32 %v2067_v52, %v1308_v28  ;;  %v2068_v32 = vld [vmem:[#allocation2 + $0x48] sm:$0xff] }
 0x8b7   :  { %v1832_v30 = vmul.f32 %v1812_v42, %v1337_v34 }
 0x8b8   :  { %v1828_v19 = vmul.f32 %v2055_v10, %v2917_v15  ;;  %v1813_v46 = vsel %vm1302_vm12, %v2050_v8, %v2054_v60  ;;  %v1814_v41 = vsel %vm1302_vm12, %v2054_v60, %v2055_v10  ;;  %v1309_v15 = vsel %vm1302_vm12, %v1293_v1, %v1295_v62 }
 0x8b9   :  { %v1826_v24 = vmul.f32 %v1813_v46, %v2914_v47  ;;  %v1827_v45 = vmul.f32 %v1814_v41, %v2920_v63  ;;  %v1336_v54 = vadd.f32 %v2068_v32, %v1309_v15  ;;  %v1830_v18 = vmul.f32 %v1810_v58, %v1335_v14  ;;  %v2070_v47 = vld [vmem:[#allocation2 + $0x58] sm:$0xff] }
 0x8ba   :  { %1862 = vrot.lane.b32.xlu1 %v1828_v19, %s2182_s8  ;;  %1852 = vrot.lane.b32.xlu0 %v1823_v50, %s2182_s8  ;;  %v1338_v63 = vadd.f32 %v2070_v47, %v1311_v13  ;;  %v1834_v20 = vmul.f32 %v1814_v41, %v1339_v53  ;;  %v1835_v37 = vmul.f32 %v2055_v10, %v1340_v51 }
 0x8bb   :  { %v1831_v6 = vmul.f32 %v1811_v25, %v1336_v54 }
 0x8bc   :  { %v1833_v26 = vmul.f32 %v1813_v46, %v1338_v63 }
 0x8be   :  { %1854 = vrot.lane.b32.xlu1 %v1824_v36, %s2182_s8  ;;  %1856 = vrot.lane.b32.xlu0 %v1825_v17, %s2182_s8 }
 0x8c2   :  { %1858 = vrot.lane.b32.xlu1 %v1826_v24, %s2182_s8  ;;  %1860 = vrot.lane.b32.xlu0 %v1827_v45, %s2182_s8 }
 0x8c6   :  { %1866 = vrot.lane.b32.xlu1 %v1830_v18, %s2182_s8  ;;  %1868 = vrot.lane.b32.xlu0 %v1831_v6, %s2182_s8 }
 0x8ca   :  { %1870 = vrot.lane.b32.xlu1 %v1832_v30, %s2182_s8  ;;  %1872 = vrot.lane.b32.xlu0 %v1833_v26, %s2182_s8 }
 0x8ce   :  { %1874 = vrot.lane.b32.xlu1 %v1834_v20, %s2182_s8  ;;  %1876 = vrot.lane.b32.xlu0 %v1835_v37, %s2182_s8 }
 0x928   :  { %v1865_v2 = vpop.permute.xlu0 %1864  ;;  %v1851_v21 = vpop.permute.xlu1 %1850 }
 0x92c   :  { %v1863_v56 = vpop.permute.xlu1 %1862  ;;  %v1853_v4 = vpop.permute.xlu0 %1852 }
 0x92d   :  { %v1878_v11 = vsel %vm840_vm8, %v1851_v21, %v1853_v4 }
 0x92e   :  { %1902 = vst [vmem:[#allocation8] sm:$0xff] %v1878_v11 }
 0x930   :  { %v1855_v40 = vpop.permute.xlu1 %1854  ;;  %v1857_v55 = vpop.permute.xlu0 %1856 }
 0x931   :  { %v1879_v39 = vsel %vm840_vm8, %v1853_v4, %v1855_v40  ;;  %v1880_v57 = vsel %vm840_vm8, %v1855_v40, %v1857_v55 }
 0x932   :  { %1903 = vst [vmem:[#allocation8 + $0x8] sm:$0xff] %v1879_v39  ;;  %1904 = vst [vmem:[#allocation8 + $0x10] sm:$0xff] %v1880_v57 }
 0x934   :  { %v1859_v5 = vpop.permute.xlu1 %1858  ;;  %v1861_v12 = vpop.permute.xlu0 %1860 }
 0x935   :  { %v1881_v49 = vsel %vm840_vm8, %v1857_v55, %v1859_v5  ;;  %v1883_v1 = vsel %vm840_vm8, %v1861_v12, %v1863_v56  ;;  %v1882_v62 = vsel %vm840_vm8, %v1859_v5, %v1861_v12 }
 0x936   :  { %1905 = vst [vmem:[#allocation8 + $0x18] sm:$0xff] %v1881_v49  ;;  %1907 = vst [vmem:[#allocation8 + $0x28] sm:$0xff] %v1883_v1 }
 0x937   :  { %1906 = vst [vmem:[#allocation8 + $0x20] sm:$0xff] %v1882_v62 }
 0x938   :  { %v1867_v38 = vpop.permute.xlu1 %1866  ;;  %v1869_v0 = vpop.permute.xlu0 %1868 }
 0x939   :  { %v1884_v59 = vsel %vm840_vm8, %v1865_v2, %v1867_v38  ;;  %v1885_v43 = vsel %vm840_vm8, %v1867_v38, %v1869_v0 }
 0x93a   :  { %1908 = vst [vmem:[#allocation8 + $0x30] sm:$0xff] %v1884_v59  ;;  %1909 = vst [vmem:[#allocation8 + $0x38] sm:$0xff] %v1885_v43 }
 0x93c   :  { %v1871_v3 = vpop.permute.xlu1 %1870  ;;  %v1873_v48 = vpop.permute.xlu0 %1872 }
 0x93d   :  { %v1886_v44 = vsel %vm840_vm8, %v1869_v0, %v1871_v3  ;;  %v1887_v29 = vsel %vm840_vm8, %v1871_v3, %v1873_v48 }
 0x93e   :  { %1910 = vst [vmem:[#allocation8 + $0x40] sm:$0xff] %v1886_v44  ;;  %1911 = vst [vmem:[#allocation8 + $0x48] sm:$0xff] %v1887_v29 }
 0x940   :  { %v1875_v9 = vpop.permute.xlu1 %1874  ;;  %v1877_v22 = vpop.permute.xlu0 %1876 }
 0x941   :  { %v1888_v27 = vsel %vm840_vm8, %v1873_v48, %v1875_v9  ;;  %v1889_v7 = vsel %vm840_vm8, %v1875_v9, %v1877_v22 }
 0x942   :  { %1912 = vst [vmem:[#allocation8 + $0x50] sm:$0xff] %v1888_v27  ;;  %1913 = vst [vmem:[#allocation8 + $0x58] sm:$0xff] %v1889_v7 }
 0x943   :  { %2150 = shalt.err (!%p2147_p0)
}
 0x944   :  { %s2151_s17 = scalar_lea.hbm %s3204_s4, 1536 }
 0x945   :  { %p2152_p1 = scmp.ne.s32.totalorder %s3204_s4, %s2151_s17  ;;  %p2155_p2 = scmp.lt.u32.totalorder %s2151_s17, %s3204_s4 }
 0x947   :  { %p2157_p3 = pnand %p2155_p2, %p2152_p1 }
 0x949   :  { %2160 = shalt.err (!%p2157_p3)
}
 0x94a   :  { %s2190_s23 = smov 768   ;;  %s2191_s24 = smov 48  }
 0x94b   :  { %1925 = dma.vmem_to_hbm [thread:$0]  %s1920_s13, 1536, %s3204_s4, [#allocation4], %s2190_s23, %s2190_s23, %s2191_s24  }
 0x94c   :  { %2165 = dma.done.wait [#allocation4], 1536  }
 0x94d   :  { %2166 = vsyncadd [#allocation4], 4294965760 }
 0x94e   :  { %1929 = vsyncpa [#allocation3], 1 }
 0x94f   :  { %1930 = vsyncpa [#allocation6], 1 }
 0x950   :  { %1931 = vsyncpa [#allocation4], 1 }

</bundles_post_ra>
